<compile_context>
chip_gen: v7x
topology: tpu7x:2x2x1
jax: 0.10.0
libtpu: 0.0.40
codegen_flags: <defaults>
</compile_context>

<pallas_src>
import functools

import jax
import jax.numpy as jnp
from jax import lax
from jax.experimental import pallas as pl
from jax.experimental.pallas import tpu as pltpu

BIG = 1e30  # "infinity" used to mask already-selected neighbours (dists stay f32)


# ----------------------------------------------------------------------------
# Kernel 1: fused fc1 + packed QKV projection, tiled over M = B*N rows.
# ----------------------------------------------------------------------------
def _proj_kernel(x_ref, w1_ref, b1_ref, wqkv_ref, q_ref, kv_ref):
    # x: (tM, dp) f32; w1: (dp, dm) bf16; b1: (1, dm) f32; wqkv: (dm, 3*dm) bf16
    dm = w1_ref.shape[1]
    x = x_ref[...]
    h = jnp.dot(x.astype(jnp.bfloat16), w1_ref[...],
                preferred_element_type=jnp.float32) + b1_ref[...]
    qkv = jnp.dot(h.astype(jnp.bfloat16), wqkv_ref[...],
                  preferred_element_type=jnp.float32)        # (tM, 3*dm)
    q_ref[...] = qkv[:, :dm]                                  # f32 (used in q - k + pe)
    kv_ref[...] = qkv[:, dm:].astype(jnp.bfloat16)            # packed K||V, bf16


def project_qkv(features, w1, b1, wq, wk, wv):
    """features: (B, N, dp) -> q (B, N, dm) f32, kv (B, N, 2*dm) bf16."""
    B, N, dp = features.shape
    dm = w1.shape[1]
    M = B * N
    # streaming GEMM is output-bandwidth bound -> prefer big row tiles
    tm = next((c for c in (1024, 512, 256, 128, 64, 32, 16, 8) if M % c == 0), M)
    x2 = features.reshape(M, dp)
    wqkv = jnp.concatenate([wq, wk, wv], axis=1).astype(jnp.bfloat16)  # (dm, 3*dm)

    q, kv = pl.pallas_call(
        _proj_kernel,
        out_shape=(
            jax.ShapeDtypeStruct((M, dm), jnp.float32),
            jax.ShapeDtypeStruct((M, 2 * dm), jnp.bfloat16),
        ),
        grid=(M // tm,),
        in_specs=[
            pl.BlockSpec((tm, dp), lambda i: (i, 0)),
            pl.BlockSpec((dp, dm), lambda i: (0, 0)),
            pl.BlockSpec((1, dm), lambda i: (0, 0)),
            pl.BlockSpec((dm, 3 * dm), lambda i: (0, 0)),
        ],
        out_specs=(
            pl.BlockSpec((tm, dm), lambda i: (i, 0)),
            pl.BlockSpec((tm, 2 * dm), lambda i: (i, 0)),
        ),
        compiler_params=pltpu.CompilerParams(
            dimension_semantics=("parallel",)),
    )(x2, w1.astype(jnp.bfloat16), b1.reshape(1, dm), wqkv)
    return q.reshape(B, N, dm), kv.reshape(B, N, 2 * dm)


# ----------------------------------------------------------------------------
# Kernel 2: fused kNN + vector attention per (batch, query-tile).
# ----------------------------------------------------------------------------
def _attn_kernel(xq_ref, xs_ref, xst_ref, q_ref, kv_ref, pre_ref,
                 wd1_ref, bd1_ref, wd2_ref, bd2_ref,
                 wg1_ref, bg1_ref, wg2_ref, bg2_ref,
                 w2_ref, b2_ref,
                 res_ref, attn_ref, *, knn, scale):
    f32 = jnp.float32
    hi = jax.lax.Precision.HIGHEST

    xq = xq_ref[0]                       # (tq, 8)    f32 (coords padded to 8)
    xs = xs_ref[0]                       # (N, 8)     f32
    xst = xst_ref[0]                     # (8, N)     f32
    qv = q_ref[0]                        # (tq, dm)   f32
    kvm = kv_ref[0]                      # (N, 2*dm)  bf16  (packed K||V)

    tq = xq.shape[0]
    n = xs.shape[0]
    dm = qv.shape[-1]

    # squared pairwise distances ||q||^2 - 2 q.s + ||s||^2  -> (tq, N)
    # HIGHEST keeps the dot in (near-)f32 so neighbour ordering matches the ref.
    qn = jnp.sum(xq * xq, axis=-1, keepdims=True)            # (tq, 1)
    sn = jnp.sum(xst * xst, axis=0, keepdims=True)           # (1, N)
    dists = qn - 2.0 * jnp.dot(xq, xst, precision=hi,
                               preferred_element_type=f32) + sn

    iota = lax.broadcasted_iota(jnp.int32, (tq, n), 1)

    # --- iterative top-k: ONLY argmin + masking stays inside the loop -------
    # (two reductions/step keeps exact lowest-index tie-breaking)
    onehots = []
    for _ in range(knn):
        minval = jnp.min(dists, axis=-1, keepdims=True)                  # (tq, 1)
        first = jnp.min(jnp.where(dists == minval, iota, n),
                        axis=-1, keepdims=True)                          # (tq, 1)
        onehot = (iota == first).astype(f32)                             # (tq, N)
        dists = jnp.where(onehot > 0.0, BIG, dists)
        onehots.append(onehot)
    oh = jnp.concatenate(onehots, axis=0)                    # (knn*tq, N), nbr-major

    # --- batched neighbour gathers: one big MXU matmul each ------------------
    nbr_xyz = jnp.dot(oh, xs, precision=hi,
                      preferred_element_type=f32)            # (knn*tq, 8)  exact coords
    nbr_kv = jnp.dot(oh.astype(jnp.bfloat16), kvm,
                     preferred_element_type=f32)             # (knn*tq, 2*dm)
    nbr_k = nbr_kv[:, :dm]
    nbr_v = nbr_kv[:, dm:]

    # --- pos_enc = fc_delta(xyz_q - knn_xyz), once over the stacked rows -----
    delta = jnp.tile(xq, (knn, 1)) - nbr_xyz                 # (knn*tq, 8)
    hid = jnp.maximum(
        jnp.dot(delta, wd1_ref[...], preferred_element_type=f32) + bd1_ref[...],
        0.0)
    pe = jnp.dot(hid.astype(jnp.bfloat16), wd2_ref[...],
                 preferred_element_type=f32) + bd2_ref[...]  # (knn*tq, dm)

    # --- attn logits = fc_gamma(q - k + pos_enc), once over the stacked rows -
    gin = jnp.tile(qv, (knn, 1)) - nbr_k + pe
    g = jnp.maximum(
        jnp.dot(gin.astype(jnp.bfloat16), wg1_ref[...],
                preferred_element_type=f32) + bg1_ref[...], 0.0)
    logits = (jnp.dot(g.astype(jnp.bfloat16), wg2_ref[...],
                      preferred_element_type=f32) + bg2_ref[...]) * scale

    # --- softmax over the neighbour axis (leading axis -> pure VPU) ----------
    lg3 = logits.reshape(knn, tq, dm)                        # free leading-dim split
    m = jnp.max(lg3, axis=0, keepdims=True)
    e = jnp.exp(lg3 - m)
    inv = 1.0 / jnp.sum(e, axis=0, keepdims=True)
    a = e * inv                                              # (knn, tq, dm)

    vpe = (nbr_v + pe).reshape(knn, tq, dm)
    acc = jnp.sum(a * vpe, axis=0)                           # (tq, dm)

    # lane-dense attn store: (tq, knn*dm); wrapper reshape -> (B, N, knn, dm)
    attn_ref[0] = jnp.concatenate([a[j] for j in range(knn)], axis=-1)

    # fc2 + residual
    res = jnp.dot(acc.astype(jnp.bfloat16), w2_ref[...],
                  preferred_element_type=f32) + b2_ref[...]
    res_ref[0] = res + pre_ref[0]


def transformer_block_forward(params, xyz, features, *, k):
    """
    xyz:      (B, N, 3)
    features: (B, N, d_points)
    returns:  res (B, N, d_points), attn (B, N, k, d_model)
    """
    assert xyz.shape[-1] == 3
    B, N, _ = xyz.shape
    dp = features.shape[-1]
    dm = params["w1"].shape[1]
    knn = min(k, N)
    scale = 1.0 / (float(dm) ** 0.5)

    # --- projections (kernel 1) ---
    q, kv = project_qkv(features, params["w1"], params["b1"],
                        params["wq"], params["wk"], params["wv"])

    # pad coordinates 3 -> 8 (zero padding keeps squared distances and the
    # fc_delta matmul unchanged because the extra weight rows are zero)
    xyz8 = jnp.concatenate([xyz, jnp.zeros((B, N, 5), xyz.dtype)], axis=-1)
    xyz8_t = jnp.transpose(xyz8, (0, 2, 1))                   # (B, 8, N) -- tiny
    wd1_pad = jnp.concatenate(
        [params["wd1"], jnp.zeros((5, dm), params["wd1"].dtype)], axis=0)

    # query-tile size: big lane-dense tiles, but cap knn*tq (stacked MLP rows)
    cands = [c for c in (256, 128, 64, 32, 16, 8) if N % c == 0]
    tq = cands[0] if cands else N
    for c in cands:
        if knn * c <= 2048:
            tq = c
            break
    grid = (B, N // tq)

    kernel = functools.partial(_attn_kernel, knn=knn, scale=scale)
    res, attn_flat = pl.pallas_call(
        kernel,
        out_shape=(
            jax.ShapeDtypeStruct((B, N, dp), jnp.float32),
            jax.ShapeDtypeStruct((B, N, knn * dm), jnp.float32),
        ),
        grid=grid,
        in_specs=[
            pl.BlockSpec((1, tq, 8), lambda b, i: (b, i, 0)),      # query xyz tile
            pl.BlockSpec((1, N, 8), lambda b, i: (b, 0, 0)),       # full xyz
            pl.BlockSpec((1, 8, N), lambda b, i: (b, 0, 0)),       # full xyz^T
            pl.BlockSpec((1, tq, dm), lambda b, i: (b, i, 0)),     # q tile (f32)
            pl.BlockSpec((1, N, 2 * dm), lambda b, i: (b, 0, 0)),  # packed K||V (bf16)
            pl.BlockSpec((1, tq, dp), lambda b, i: (b, i, 0)),     # residual tile
            pl.BlockSpec((8, dm), lambda b, i: (0, 0)),            # fc_delta W1 (padded)
            pl.BlockSpec((1, dm), lambda b, i: (0, 0)),
            pl.BlockSpec((dm, dm), lambda b, i: (0, 0)),           # fc_delta W2
            pl.BlockSpec((1, dm), lambda b, i: (0, 0)),
            pl.BlockSpec((dm, dm), lambda b, i: (0, 0)),           # fc_gamma W1
            pl.BlockSpec((1, dm), lambda b, i: (0, 0)),
            pl.BlockSpec((dm, dm), lambda b, i: (0, 0)),           # fc_gamma W2
            pl.BlockSpec((1, dm), lambda b, i: (0, 0)),
            pl.BlockSpec((dm, dp), lambda b, i: (0, 0)),           # fc2 W
            pl.BlockSpec((1, dp), lambda b, i: (0, 0)),
        ],
        out_specs=(
            pl.BlockSpec((1, tq, dp), lambda b, i: (b, i, 0)),
            pl.BlockSpec((1, tq, knn * dm), lambda b, i: (b, i, 0)),
        ),
        compiler_params=pltpu.CompilerParams(
            dimension_semantics=("parallel", "parallel"),
            # 48 MiB leaves headroom on v7x's 64 MiB VMEM; also fine on v5e/v6e.
            vmem_limit_bytes=48 * 1024 * 1024),
    )(xyz8, xyz8, xyz8_t, q, kv, features,
      wd1_pad, params["bd1"].reshape(1, dm),
      params["wd2"].astype(jnp.bfloat16), params["bd2"].reshape(1, dm),
      params["wg1"].astype(jnp.bfloat16), params["bg1"].reshape(1, dm),
      params["wg2"].astype(jnp.bfloat16), params["bg2"].reshape(1, dm),
      params["w2"].astype(jnp.bfloat16), params["b2"].reshape(1, dp))

    # free row-major split of the last dim (no transpose, no HBM round trip)
    attn = attn_flat.reshape(B, N, knn, dm)
    return res, attn


def init_params(key, d_points, d_model):
    ks = jax.random.split(key, 16)
    s = 0.1
    nrm = jax.random.normal
    return {
        "w1": s * nrm(ks[0], (d_points, d_model), jnp.float32),
        "b1": s * nrm(ks[1], (d_model,), jnp.float32),
        "wq": s * nrm(ks[2], (d_model, d_model), jnp.float32),
        "wk": s * nrm(ks[3], (d_model, d_model), jnp.float32),
        "wv": s * nrm(ks[4], (d_model, d_model), jnp.float32),
        "wd1": s * nrm(ks[5], (3, d_model), jnp.float32),
        "bd1": s * nrm(ks[6], (d_model,), jnp.float32),
        "wd2": s * nrm(ks[7], (d_model, d_model), jnp.float32),
        "bd2": s * nrm(ks[8], (d_model,), jnp.float32),
        "wg1": s * nrm(ks[9], (d_model, d_model), jnp.float32),
        "bg1": s * nrm(ks[10], (d_model,), jnp.float32),
        "wg2": s * nrm(ks[11], (d_model, d_model), jnp.float32),
        "bg2": s * nrm(ks[12], (d_model,), jnp.float32),
        "w2": s * nrm(ks[13], (d_model, d_points), jnp.float32),
        "b2": s * nrm(ks[14], (d_points,), jnp.float32),
    }


if __name__ == "__main__":
    B, N = 2, 256
    d_points, d_model, k = 64, 128, 8

    key = jax.random.PRNGKey(0)
    kxyz, kfeat, kparam = jax.random.split(key, 3)
    xyz = jax.random.normal(kxyz, (B, N, 3), jnp.float32)
    features = jax.random.normal(kfeat, (B, N, d_points), jnp.float32)
    params = init_params(kparam, d_points, d_model)

    res, attn = transformer_block_forward(params, xyz, features, k=k)
    jax.block_until_ready((res, attn))

    assert res.shape == (B, N, d_points)
    assert attn.shape == (B, N, k, d_model)
    assert bool(jnp.all(jnp.isfinite(res)))
    assert bool(jnp.all(jnp.isfinite(attn)))
    # softmax over the neighbour axis must sum to 1 per (b, m, channel)
    assert bool(jnp.allclose(jnp.sum(attn, axis=2), 1.0, atol=1e-3))
    print("KERNEL_OK")
</pallas_src>

<mosaic_0001>
module attributes {stable_mosaic.version = 11 : i64} {
  func.func @_proj_kernel(%arg0: i32, %arg1: memref<512x64xf32, #tpu.memory_space<vmem>>, %arg2: memref<64x128xbf16, #tpu.memory_space<vmem>>, %arg3: memref<1x128xf32, #tpu.memory_space<vmem>>, %arg4: memref<128x384xbf16, #tpu.memory_space<vmem>>, %arg5: memref<512x128xf32, #tpu.memory_space<vmem>>, %arg6: memref<512x256xbf16, #tpu.memory_space<vmem>>) attributes {dimension_semantics = [#tpu.dimension_semantics<parallel>], iteration_bounds = array<i64: 1>, scalar_prefetch = 0 : i64, scratch_operands = 0 : i64, tpu.core_type = #tpu.core_type<tc>, window_params = [{transform_indices = @transform_0, window_bounds = array<i64: 512, 64>}, {pipeline_mode = #tpu.pipeline_mode<synchronous>, transform_indices = @transform_1, window_bounds = array<i64: 64, 128>}, {pipeline_mode = #tpu.pipeline_mode<synchronous>, transform_indices = @transform_2, window_bounds = array<i64: 1, 128>}, {pipeline_mode = #tpu.pipeline_mode<synchronous>, transform_indices = @transform_3, window_bounds = array<i64: 128, 384>}, {transform_indices = @transform_4, window_bounds = array<i64: 512, 128>}, {transform_indices = @transform_5, window_bounds = array<i64: 512, 256>}]} {
    %c0 = arith.constant 0 : index
    %c0_0 = arith.constant 0 : index
    %0 = vector.load %arg1[%c0, %c0_0] : memref<512x64xf32, #tpu.memory_space<vmem>>, vector<512x64xf32>
    %1 = arith.truncf %0 : vector<512x64xf32> to vector<512x64xbf16>
    %c0_1 = arith.constant 0 : index
    %c0_2 = arith.constant 0 : index
    %2 = vector.load %arg2[%c0_1, %c0_2] : memref<64x128xbf16, #tpu.memory_space<vmem>>, vector<64x128xbf16>
    %cst = arith.constant dense<0.000000e+00> : vector<512x128xf32>
    %3 = tpu.matmul %1, %2, %cst {dimension_numbers = #tpu.dot_dimension_numbers<[1], [0], [0], [1], [0, 0, 1, 1], [], []>} : vector<512x64xbf16>, vector<64x128xbf16>, vector<512x128xf32> -> vector<512x128xf32>
    %c0_3 = arith.constant 0 : index
    %c0_4 = arith.constant 0 : index
    %4 = vector.load %arg3[%c0_3, %c0_4] : memref<1x128xf32, #tpu.memory_space<vmem>>, vector<1x128xf32>
    %5 = vector.broadcast %4 : vector<1x128xf32> to vector<512x128xf32>
    %6 = arith.addf %3, %5 : vector<512x128xf32>
    %7 = arith.truncf %6 : vector<512x128xf32> to vector<512x128xbf16>
    %c0_5 = arith.constant 0 : index
    %c0_6 = arith.constant 0 : index
    %8 = vector.load %arg4[%c0_5, %c0_6] : memref<128x384xbf16, #tpu.memory_space<vmem>>, vector<128x384xbf16>
    %cst_7 = arith.constant dense<0.000000e+00> : vector<512x384xf32>
    %9 = tpu.matmul %7, %8, %cst_7 {dimension_numbers = #tpu.dot_dimension_numbers<[1], [0], [0], [1], [0, 0, 1, 1], [], []>} : vector<512x128xbf16>, vector<128x384xbf16>, vector<512x384xf32> -> vector<512x384xf32>
    %10 = vector.extract_strided_slice %9 {offsets = [0, 0], sizes = [512, 128], strides = [1, 1]} : vector<512x384xf32> to vector<512x128xf32>
    %c0_8 = arith.constant 0 : index
    %c0_9 = arith.constant 0 : index
    %11 = vector.load %arg5[%c0_8, %c0_9] : memref<512x128xf32, #tpu.memory_space<vmem>>, vector<512x128xf32>
    tpu.vector_store %arg5[%c0_8, %c0_9], %10 {strides = array<i32>} : memref<512x128xf32, #tpu.memory_space<vmem>>, vector<512x128xf32>,
    %12 = vector.extract_strided_slice %9 {offsets = [0, 128], sizes = [512, 256], strides = [1, 1]} : vector<512x384xf32> to vector<512x256xf32>
    %13 = arith.truncf %12 : vector<512x256xf32> to vector<512x256xbf16>
    %c0_10 = arith.constant 0 : index
    %c0_11 = arith.constant 0 : index
    %14 = vector.load %arg6[%c0_10, %c0_11] : memref<512x256xbf16, #tpu.memory_space<vmem>>, vector<512x256xbf16>
    tpu.vector_store %arg6[%c0_10, %c0_11], %13 {strides = array<i32>} : memref<512x256xbf16, #tpu.memory_space<vmem>>, vector<512x256xbf16>,
    return
  }
  func.func @transform_0(%arg0: i32) -> (i32, i32) {
    %c0_i32 = arith.constant 0 : i32
    %c0_i32_0 = arith.constant 0 : i32
    return %arg0, %c0_i32 : i32, i32
  }
  func.func @transform_1(%arg0: i32) -> (i32, i32) {
    %c0_i32 = arith.constant 0 : i32
    %c0_i32_0 = arith.constant 0 : i32
    %c0_i32_1 = arith.constant 0 : i32
    return %c0_i32, %c0_i32_0 : i32, i32
  }
  func.func @transform_2(%arg0: i32) -> (i32, i32) {
    %c0_i32 = arith.constant 0 : i32
    %c0_i32_0 = arith.constant 0 : i32
    %c0_i32_1 = arith.constant 0 : i32
    return %c0_i32, %c0_i32_0 : i32, i32
  }
  func.func @transform_3(%arg0: i32) -> (i32, i32) {
    %c0_i32 = arith.constant 0 : i32
    %c0_i32_0 = arith.constant 0 : i32
    %c0_i32_1 = arith.constant 0 : i32
    return %c0_i32, %c0_i32_0 : i32, i32
  }
  func.func @transform_4(%arg0: i32) -> (i32, i32) {
    %c0_i32 = arith.constant 0 : i32
    %c0_i32_0 = arith.constant 0 : i32
    return %arg0, %c0_i32 : i32, i32
  }
  func.func @transform_5(%arg0: i32) -> (i32, i32) {
    %c0_i32 = arith.constant 0 : i32
    %c0_i32_0 = arith.constant 0 : i32
    return %arg0, %c0_i32 : i32, i32
  }
}

</mosaic_0001>

<bundles_post_ra>
// kernel: tpu_custom_call.1
= control target key start
LH: loop header
LB: loop body
LE: loop exit
PB: predicated region body
PF: predicated region fallthrough
CT: control target
= control target key end

     0   :  { %11 = vsyncpa [#allocation3], 0  ;;  %vm157_vm0 = vcmask 523264   ;;  %s3137_s0 = inlined_call_operand.vmem [shape: f32[512,64], index: 0, kind: input, shape index: {}]   ;;  %s3138_s1 = inlined_call_operand.vmem [shape: bf16[64,128], index: 1, kind: input, shape index: {}]   ;;  %s3139_s2 = inlined_call_operand.vmem [shape: f32[1,128], index: 2, kind: input, shape index: {}]   ;;  %s3140_s3 = inlined_call_operand.vmem [shape: bf16[128,384], index: 3, kind: input, shape index: {}]   ;;  %s3141_s4 = inlined_call_operand.hbm [shape: f32[512,128], index: 4, kind: output, shape index: {0}]   ;;  %s3142_s5 = inlined_call_operand.hbm [shape: bf16[512,256], index: 5, kind: output, shape index: {1}]  }
   0x1   :  { %v2343_v0 = vld [vmem:[%s3138_s1] sm:$0xff]   ;;  %v2344_v1 = vld [vmem:[%s3138_s1 + $0x8] sm:$0xff]   ;;  %v2345_v2 = vld [vmem:[%s3138_s1 + $0x10] sm:$0xff]  }
   0x2   :  { %2186 = vmatprep.subr.bf16.mxu0 %v2343_v0  ;;  %v22_v3 = vld [vmem:[%s3137_s0] sm:$0xff]  ;;  %v23_v4 = vld [vmem:[%s3137_s0 + $0x8] sm:$0xff]  ;;  %v2346_v6 = vld [vmem:[%s3138_s1 + $0x18] sm:$0xff]  }
   0x3   :  { %2187 = vmatpush3.bf16.msra.mxu0 %v2343_v0  ;;  %v86_v5 = vpack.c.bf16 %v23_v4, %v22_v3  ;;  %v24_v7 = vld [vmem:[%s3137_s0 + $0x10] sm:$0xff]  ;;  %v25_v8 = vld [vmem:[%s3137_s0 + $0x18] sm:$0xff]  ;;  %v26_v9 = vld [vmem:[%s3137_s0 + $0x20] sm:$0xff] }
   0x4   :  { %2188 = vmatprep.subr.bf16.mxu0 %v2344_v1  ;;  %v27_v10 = vld [vmem:[%s3137_s0 + $0x28] sm:$0xff]  ;;  %v87_v11 = vpack.c.bf16 %v25_v8, %v24_v7  ;;  %v28_v13 = vld [vmem:[%s3137_s0 + $0x30] sm:$0xff]  ;;  %v29_v14 = vld [vmem:[%s3137_s0 + $0x38] sm:$0xff] }
   0x5   :  { %2194 = vmatprep.mubr.msk.bf16.mxu0 %vm157_vm0, %v86_v5  ;;  %v88_v12 = vpack.c.bf16 %v27_v10, %v26_v9  ;;  %v30_v15 = vld [vmem:[%s3137_s0 + $0x40] sm:$0xff]  ;;  %v31_v16 = vld [vmem:[%s3137_s0 + $0x48] sm:$0xff]  ;;  %v89_v17 = vpack.c.bf16 %v29_v14, %v28_v13  ;;  %v32_v25 = vld [vmem:[%s3137_s0 + $0x50] sm:$0xff] }
   0x6   :  { %v2347_v18 = vld [vmem:[%s3140_s3 + $0x4] ss:$12 sps:$4 sm:$0xff]   ;;  %v2349_v19 = vld [vmem:[%s3140_s3] ss:$12 sps:$4 sm:$0xff]   ;;  %v90_v20 = vpack.c.bf16 %v31_v16, %v30_v15  ;;  %v2350_v21 = vld [vmem:[%s3140_s3 + $0x8] ss:$12 sps:$4 sm:$0xff]  }
   0x7   :  { %2189 = vmatpush3.bf16.msra.mxu0 %v2344_v1  ;;  %735 = vmatprep.subr.bf16.mxu1 %v2347_v18  ;;  %v2351_v22 = vld [vmem:[%s3140_s3 + $0x1c] ss:$12 sps:$4 sm:$0xff]   ;;  %v2353_v23 = vld [vmem:[%s3140_s3 + $0x18] ss:$12 sps:$4 sm:$0xff]   ;;  %v2354_v24 = vld [vmem:[%s3140_s3 + $0x20] ss:$12 sps:$4 sm:$0xff]  }
   0x8   :  { %2190 = vmatprep.subr.bf16.mxu0 %v2345_v2  ;;  %736 = vmatpush1.bf16.msra.mxu1 %v2349_v19  ;;  %v33_v26 = vld [vmem:[%s3137_s0 + $0x58] sm:$0xff]  ;;  %v34_v27 = vld [vmem:[%s3137_s0 + $0x60] sm:$0xff]  ;;  %v35_v29 = vld [vmem:[%s3137_s0 + $0x68] sm:$0xff] }
   0x9   :  { %737 = vmatprep.subr.bf16.mxu1 %v2351_v22  ;;  %v2355_v28 = vld [vmem:[%s3140_s3 + $0x34] ss:$12 sps:$4 sm:$0xff]   ;;  %v2357_v30 = vld [vmem:[%s3140_s3 + $0x30] ss:$12 sps:$4 sm:$0xff]   ;;  %v2358_v31 = vld [vmem:[%s3140_s3 + $0x38] ss:$12 sps:$4 sm:$0xff]   ;;  %v91_v32 = vpack.c.bf16 %v33_v26, %v32_v25  ;;  %v92_v34 = vpack.c.bf16 %v35_v29, %v34_v27 }
   0xa   :  { %v2359_v33 = vld [vmem:[%s3140_s3 + $0x4c] ss:$12 sps:$4 sm:$0xff]   ;;  %v2362_v35 = vld [vmem:[%s3140_s3 + $0x50] ss:$12 sps:$4 sm:$0xff]   ;;  %v2361_v38 = vld [vmem:[%s3140_s3 + $0x48] ss:$12 sps:$4 sm:$0xff]  }
   0xb   :  { %2191 = vmatpush3.bf16.msra.mxu0 %v2345_v2  ;;  %v36_v36 = vld [vmem:[%s3137_s0 + $0x70] sm:$0xff]  ;;  %v37_v37 = vld [vmem:[%s3137_s0 + $0x78] sm:$0xff]  ;;  %v38_v39 = vld [vmem:[%s3137_s0 + $0x80] sm:$0xff] }
   0xc   :  { %2192 = vmatprep.subr.bf16.mxu0 %v2346_v6  ;;  %738 = vmatpush1.bf16.msra.mxu1 %v2353_v23  ;;  %v2363_v40 = vld [vmem:[%s3140_s3 + $0x64] ss:$12 sps:$4 sm:$0xff]   ;;  %v39_v41 = vld [vmem:[%s3137_s0 + $0x88] sm:$0xff]  ;;  %v93_v45 = vpack.c.bf16 %v37_v37, %v36_v36 }
   0xd   :  { %739 = vmatprep.subr.bf16.mxu1 %v2355_v28  ;;  %v2365_v42 = vld [vmem:[%s3140_s3 + $0x60] ss:$12 sps:$4 sm:$0xff]   ;;  %v2366_v43 = vld [vmem:[%s3140_s3 + $0x68] ss:$12 sps:$4 sm:$0xff]   ;;  %v94_v47 = vpack.c.bf16 %v39_v41, %v38_v39 }
   0xe   :  { %v2367_v44 = vld [vmem:[%s3140_s3 + $0x7c] ss:$12 sps:$4 sm:$0xff]   ;;  %v2370_v46 = vld [vmem:[%s3140_s3 + $0x80] ss:$12 sps:$4 sm:$0xff]  }
   0xf   :  { %2193 = vmatpush3.bf16.msra.mxu0 %v2346_v6 }
  0x10   :  { %2258 = vmatprep.subr.bf16.mxu0 %v2350_v21  ;;  %740 = vmatpush1.bf16.msra.mxu1 %v2357_v30 }
  0x11   :  { %741 = vmatprep.subr.bf16.mxu1 %v2359_v33 }
  0x12   :  { %2195 = vmatmul.mubr.msk.bf16.vlgmr.msra.gmra.mrb[0].mxu0 %vm157_vm0, %v87_v11 }
  0x13   :  { %2198 = vmatprep.mubr.msk.bf16.mxu0 %vm157_vm0, %v88_v12  ;;  %2259 = vmatpush3.bf16.msra.mxu0 %v2350_v21 }
  0x14   :  { %2260 = vmatprep.subr.bf16.mxu0 %v2354_v24  ;;  %742 = vmatpush1.bf16.msra.mxu1 %v2361_v38 }
  0x15   :  { %743 = vmatprep.subr.bf16.mxu1 %v2363_v40 }
  0x17   :  { %2261 = vmatpush3.bf16.msra.mxu0 %v2354_v24 }
  0x18   :  { %2262 = vmatprep.subr.bf16.mxu0 %v2358_v31 }
  0x1a   :  { %2199 = vmatmul.mubr.msk.bf16.gmra.mrb[4].mxu0 %vm157_vm0, %v89_v17 }
  0x1b   :  { %2202 = vmatprep.mubr.msk.bf16.mxu0 %vm157_vm0, %v90_v20  ;;  %2263 = vmatpush3.bf16.msra.mxu0 %v2358_v31 }
  0x1c   :  { %2264 = vmatprep.subr.bf16.mxu0 %v2362_v35 }
  0x1f   :  { %2265 = vmatpush3.bf16.msra.mxu0 %v2362_v35 }
  0x20   :  { %2266 = vmatprep.subr.bf16.mxu0 %v2366_v43 }
  0x22   :  { %2203 = vmatmul.mubr.msk.bf16.gmra.mrb[8].mxu0 %vm157_vm0, %v91_v32 }
  0x23   :  { %2206 = vmatprep.mubr.msk.bf16.mxu0 %vm157_vm0, %v92_v34 }
  0x24   :  { %12 = vsyncpa [#allocation5], 0  ;;  %744 = vmatpush1.bf16.msra.mxu1 %v2365_v42  ;;  %v2369_v48 = vld [vmem:[%s3140_s3 + $0x78] ss:$12 sps:$4 sm:$0xff]   ;;  %v40_v49 = vld [vmem:[%s3137_s0 + $0x90] sm:$0xff]  ;;  %2267 = vmatpush3.bf16.msra.mxu0 %v2366_v43  ;;  %v2427_v43 = vmov 0  }
  0x25   :  { %745 = vmatprep.subr.bf16.mxu1 %v2367_v44  ;;  %v41_v50 = vld [vmem:[%s3137_s0 + $0x98] sm:$0xff]  ;;  %v42_v51 = vld [vmem:[%s3137_s0 + $0xa0] sm:$0xff]  ;;  %v43_v52 = vld [vmem:[%s3137_s0 + $0xa8] sm:$0xff]  ;;  %2268 = vmatprep.subr.bf16.mxu0 %v2370_v46  ;;  %s2429_s21 = smov [#allocation4]  }
  0x26   :  { %v95_v53 = vpack.c.bf16 %v41_v50, %v40_v49  ;;  %v96_v54 = vpack.c.bf16 %v43_v52, %v42_v51  ;;  %v44_v55 = vld [vmem:[%s3137_s0 + $0xb0] sm:$0xff]  ;;  %v45_v56 = vld [vmem:[%s3137_s0 + $0xb8] sm:$0xff]  ;;  %v46_v57 = vld [vmem:[%s3137_s0 + $0xc0] sm:$0xff]  ;;  %767 = vmatprep.mubr.bf16.mxu1 %v2427_v43  ;;  %s1906_s22 = sshll.u32 %s2429_s21, 4  ;;  %s3100_s22 = int_to_ptr.vmem [resolvable:$true] %s1906_s22 }
  0x27   :  { %v47_v58 = vld [vmem:[%s3137_s0 + $0xc8] sm:$0xff]  ;;  %v97_v59 = vpack.c.bf16 %v45_v56, %v44_v55  ;;  %v48_v61 = vld [vmem:[%s3137_s0 + $0xd0] sm:$0xff]  ;;  %v49_v62 = vld [vmem:[%s3137_s0 + $0xd8] sm:$0xff] }
  0x28   :  { %746 = vmatpush1.bf16.msra.mxu1 %v2369_v48  ;;  %2269 = vmatpush3.bf16.msra.mxu0 %v2370_v46  ;;  %v98_v60 = vpack.c.bf16 %v47_v58, %v46_v57  ;;  %v50_v63 = vld [vmem:[%s3137_s0 + $0xe0] sm:$0xff]  ;;  %v51_v0 = vld [vmem:[%s3137_s0 + $0xe8] sm:$0xff]  ;;  %v99_v1 = vpack.c.bf16 %v49_v62, %v48_v61  ;;  %v52_v3 = vld [vmem:[%s3137_s0 + $0xf0] sm:$0xff] }
  0x29   :  { %v100_v2 = vpack.c.bf16 %v51_v0, %v50_v63  ;;  %v53_v4 = vld [vmem:[%s3137_s0 + $0xf8] sm:$0xff]  ;;  %v54_v5 = vld [vmem:[%s3137_s0 + $0x100] sm:$0xff]  ;;  %v55_v6 = vld [vmem:[%s3137_s0 + $0x108] sm:$0xff] }
  0x2a   :  { %2207 = vmatmul.mubr.msk.bf16.gmra.mrb[12].mxu0 %vm157_vm0, %v93_v45  ;;  %v101_v7 = vpack.c.bf16 %v53_v4, %v52_v3  ;;  %v102_v8 = vpack.c.bf16 %v55_v6, %v54_v5  ;;  %v56_v9 = vld [vmem:[%s3137_s0 + $0x110] sm:$0xff]  ;;  %v57_v10 = vld [vmem:[%s3137_s0 + $0x118] sm:$0xff]  ;;  %v58_v11 = vld [vmem:[%s3137_s0 + $0x120] sm:$0xff] }
  0x2b   :  { %2210 = vmatprep.mubr.msk.bf16.mxu0 %vm157_vm0, %v94_v47  ;;  %v59_v12 = vld [vmem:[%s3137_s0 + $0x128] sm:$0xff]  ;;  %v103_v13 = vpack.c.bf16 %v57_v10, %v56_v9  ;;  %v60_v15 = vld [vmem:[%s3137_s0 + $0x130] sm:$0xff]  ;;  %v61_v16 = vld [vmem:[%s3137_s0 + $0x138] sm:$0xff] }
  0x2c   :  { %v104_v14 = vpack.c.bf16 %v59_v12, %v58_v11  ;;  %v62_v17 = vld [vmem:[%s3137_s0 + $0x140] sm:$0xff]  ;;  %v63_v18 = vld [vmem:[%s3137_s0 + $0x148] sm:$0xff]  ;;  %v105_v19 = vpack.c.bf16 %v61_v16, %v60_v15  ;;  %v64_v21 = vld [vmem:[%s3137_s0 + $0x150] sm:$0xff] }
  0x2d   :  { %v106_v20 = vpack.c.bf16 %v63_v18, %v62_v17  ;;  %v65_v22 = vld [vmem:[%s3137_s0 + $0x158] sm:$0xff]  ;;  %v66_v23 = vld [vmem:[%s3137_s0 + $0x160] sm:$0xff]  ;;  %v67_v24 = vld [vmem:[%s3137_s0 + $0x168] sm:$0xff] }
  0x2e   :  { %v107_v25 = vpack.c.bf16 %v65_v22, %v64_v21  ;;  %v108_v26 = vpack.c.bf16 %v67_v24, %v66_v23  ;;  %v68_v27 = vld [vmem:[%s3137_s0 + $0x170] sm:$0xff]  ;;  %v69_v28 = vld [vmem:[%s3137_s0 + $0x178] sm:$0xff]  ;;  %v70_v29 = vld [vmem:[%s3137_s0 + $0x180] sm:$0xff] }
  0x2f   :  { %v2371_v30 = vld [vmem:[%s3140_s3 + $0x94] ss:$12 sps:$4 sm:$0xff]   ;;  %v71_v31 = vld [vmem:[%s3137_s0 + $0x188] sm:$0xff]  ;;  %v2373_v32 = vld [vmem:[%s3140_s3 + $0x90] ss:$12 sps:$4 sm:$0xff]   ;;  %v109_v34 = vpack.c.bf16 %v69_v28, %v68_v27 }
  0x30   :  { %v2374_v33 = vld [vmem:[%s3140_s3 + $0x98] ss:$12 sps:$4 sm:$0xff]   ;;  %747 = vmatprep.subr.bf16.mxu1 %v2371_v30  ;;  %v110_v35 = vpack.c.bf16 %v71_v31, %v70_v29  ;;  %v2377_v37 = vld [vmem:[%s3140_s3 + $0xa8] ss:$12 sps:$4 sm:$0xff]   ;;  %v2378_v38 = vld [vmem:[%s3140_s3 + $0xb0] ss:$12 sps:$4 sm:$0xff]  }
  0x31   :  { %748 = vmatpush1.bf16.msra.mxu1 %v2373_v32  ;;  %2270 = vmatprep.subr.bf16.mxu0 %v2374_v33  ;;  %v2375_v36 = vld [vmem:[%s3140_s3 + $0xac] ss:$12 sps:$4 sm:$0xff]   ;;  %v72_v39 = vld [vmem:[%s3137_s0 + $0x190] sm:$0xff]  ;;  %v74_v41 = vld [vmem:[%s3137_s0 + $0x1a0] sm:$0xff] }
  0x32   :  { %2211 = vmatmul.mubr.msk.bf16.gmra.mrb[16].mxu0 %vm157_vm0, %v95_v53  ;;  %749 = vmatprep.subr.bf16.mxu1 %v2375_v36  ;;  %v73_v40 = vld [vmem:[%s3137_s0 + $0x198] sm:$0xff]  ;;  %v75_v42 = vld [vmem:[%s3137_s0 + $0x1a8] sm:$0xff]  ;;  %v76_v46 = vld [vmem:[%s3137_s0 + $0x1b0] sm:$0xff] }
  0x33   :  { %2214 = vmatprep.mubr.msk.bf16.mxu0 %vm157_vm0, %v96_v54  ;;  %2271 = vmatpush3.bf16.msra.mxu0 %v2374_v33  ;;  %v111_v44 = vpack.c.bf16 %v73_v40, %v72_v39  ;;  %v112_v45 = vpack.c.bf16 %v75_v42, %v74_v41  ;;  %v77_v47 = vld [vmem:[%s3137_s0 + $0x1b8] sm:$0xff]  ;;  %v78_v48 = vld [vmem:[%s3137_s0 + $0x1c0] sm:$0xff]  ;;  %v79_v49 = vld [vmem:[%s3137_s0 + $0x1c8] sm:$0xff] }
  0x34   :  { %2272 = vmatprep.subr.bf16.mxu0 %v2378_v38  ;;  %v113_v50 = vpack.c.bf16 %v77_v47, %v76_v46  ;;  %v114_v51 = vpack.c.bf16 %v79_v49, %v78_v48  ;;  %v80_v52 = vld [vmem:[%s3137_s0 + $0x1d0] sm:$0xff]  ;;  %v81_v53 = vld [vmem:[%s3137_s0 + $0x1d8] sm:$0xff]  ;;  %v82_v54 = vld [vmem:[%s3137_s0 + $0x1e0] sm:$0xff] }
  0x35   :  { %750 = vmatpush1.bf16.msra.mxu1 %v2377_v37  ;;  %v83_v55 = vld [vmem:[%s3137_s0 + $0x1e8] sm:$0xff]  ;;  %v115_v56 = vpack.c.bf16 %v81_v53, %v80_v52  ;;  %v84_v58 = vld [vmem:[%s3137_s0 + $0x1f0] sm:$0xff]  ;;  %v2774_v62 = vld [vmem:[%s3139_s2] ss:$0 sm:$0xff] }
  0x36   :  { %v116_v57 = vpack.c.bf16 %v83_v55, %v82_v54 }
  0x37   :  { %2273 = vmatpush3.bf16.msra.mxu0 %v2378_v38 }
  0x3a   :  { %2215 = vmatmul.mubr.msk.bf16.gmra.mrb[20].mxu0 %vm157_vm0, %v97_v59  ;;  %v85_v59 = vld [vmem:[%s3137_s0 + $0x1f8] sm:$0xff]  ;;  %s2428_s0 = smov [#allocation2]  }
  0x3b   :  { %2218 = vmatprep.mubr.msk.bf16.mxu0 %vm157_vm0, %v98_v60  ;;  %v117_v60 = vpack.c.bf16 %v85_v59, %v84_v58  ;;  %s1894_s2 = sshll.u32 %s2428_s0, 4  ;;  %s3097_s2 = int_to_ptr.vmem [resolvable:$true] %s1894_s2 }
  0x3c   :  { %s2379_s23 = scalar_lea.vmem %s3097_s2, 8192  ;;  %p2384_p1 = scmp.lt.s32.totalorder %s3097_s2, %s3097_s2 }
  0x3d   :  { %p2380_p0 = scmp.ne.s32.totalorder %s3097_s2, %s2379_s23  ;;  %p2385_p2 = scmp.lt.s32.totalorder %s2379_s23, %s2379_s23 }
  0x3f   :  { %p2386_p3 = por %p2385_p2, %p2384_p1 }
  0x41   :  { %p2387_p4 = pnand %p2386_p3, %p2380_p0 }
  0x42   :  { %2219 = vmatmul.mubr.msk.bf16.gmra.mrb[24].mxu0 %vm157_vm0, %v99_v1 }
  0x43   :  { %2222 = vmatprep.mubr.msk.bf16.mxu0 %vm157_vm0, %v100_v2 }
  0x4a   :  { %2223 = vmatmul.mubr.msk.bf16.gmra.mrb[28].mxu0 %vm157_vm0, %v101_v7 }
  0x4b   :  { %2226 = vmatprep.mubr.msk.bf16.mxu0 %vm157_vm0, %v102_v8 }
  0x52   :  { %2227 = vmatmul.mubr.msk.bf16.gmra.mrb[32].mxu0 %vm157_vm0, %v103_v13 }
  0x53   :  { %2230 = vmatprep.mubr.msk.bf16.mxu0 %vm157_vm0, %v104_v14 }
  0x5a   :  { %2231 = vmatmul.mubr.msk.bf16.gmra.mrb[36].mxu0 %vm157_vm0, %v105_v19 }
  0x5b   :  { %2234 = vmatprep.mubr.msk.bf16.mxu0 %vm157_vm0, %v106_v20 }
  0x62   :  { %2235 = vmatmul.mubr.msk.bf16.gmra.mrb[40].mxu0 %vm157_vm0, %v107_v25 }
  0x63   :  { %2238 = vmatprep.mubr.msk.bf16.mxu0 %vm157_vm0, %v108_v26 }
  0x6a   :  { %2239 = vmatmul.mubr.msk.bf16.gmra.mrb[44].mxu0 %vm157_vm0, %v109_v34 }
  0x6b   :  { %2242 = vmatprep.mubr.msk.bf16.mxu0 %vm157_vm0, %v110_v35 }
  0x72   :  { %2243 = vmatmul.mubr.msk.bf16.gmra.mrb[48].mxu0 %vm157_vm0, %v111_v44 }
  0x73   :  { %2246 = vmatprep.mubr.msk.bf16.mxu0 %vm157_vm0, %v112_v45 }
  0x7a   :  { %2247 = vmatmul.mubr.msk.bf16.gmra.mrb[52].mxu0 %vm157_vm0, %v113_v50 }
  0x7b   :  { %2250 = vmatprep.mubr.msk.bf16.mxu0 %vm157_vm0, %v114_v51 }
  0x82   :  { %2251 = vmatmul.mubr.msk.bf16.gmra.mrb[56].mxu0 %vm157_vm0, %v115_v56 }
  0x83   :  { %2254 = vmatprep.mubr.msk.bf16.mxu0 %vm157_vm0, %v116_v57 }
  0x8a   :  { %2255 = vmatmul.mubr.msk.bf16.gmra.mrb[60].mxu0 %vm157_vm0, %v117_v60 }
  0xe5   :  { %v2196_v61 = vpop.f32.mrb[0].mxu0 }
  0xe6   :  { %v288_v63 = vpop.f32.mrb[1].mxu0  ;;  %v297_v1 = vadd.f32 %v2196_v61, %v2774_v62 }
  0xe7   :  { %v2197_v0 = vpop.f32.mrb[2].mxu0  ;;  %v289_v4 = vadd.f32 %v2774_v62, %v288_v63 }
  0xe8   :  { %v300_v2 = vadd.f32 %v2197_v0, %v2774_v62  ;;  %v291_v3 = vpop.f32.mrb[3].mxu0 }
  0xe9   :  { %v292_v5 = vadd.f32 %v2774_v62, %v291_v3 }
  0xea   :  { %v544_v6 = vpack.c.bf16 %v300_v2, %v297_v1 }
  0xeb   :  { %v543_v7 = vpack.c.bf16 %v292_v5, %v289_v4 }
  0xed   :  { %768 = vmatmul.mubr.bf16.vlgmr.msra.gmra.mrb[0].mxu1 %v543_v7  ;;  %2274 = vmatprep.mubr.bf16.mxu0 %v543_v7  ;;  %v2200_v8 = vpop.f32.mrb[4].mxu0 }
  0xee   :  { %v313_v9 = vadd.f32 %v2200_v8, %v2774_v62  ;;  %2275 = vmatmul.mubr.bf16.vlgmr.msra.gmra.mrb[64].mxu0 %v544_v6  ;;  %v304_v10 = vpop.f32.mrb[5].mxu0  ;;  %777 = vmatprep.mubr.bf16.mxu1 %v2427_v43 }
  0xef   :  { %v305_v11 = vadd.f32 %v2774_v62, %v304_v10  ;;  %v2201_v12 = vpop.f32.mrb[6].mxu0 }
  0xf0   :  { %v316_v13 = vadd.f32 %v2201_v12, %v2774_v62  ;;  %v307_v14 = vpop.f32.mrb[7].mxu0 }
  0xf1   :  { %v308_v15 = vadd.f32 %v2774_v62, %v307_v14 }
  0xf2   :  { %v546_v16 = vpack.c.bf16 %v316_v13, %v313_v9 }
  0xf3   :  { %v545_v17 = vpack.c.bf16 %v308_v15, %v305_v11 }
  0xf5   :  { %778 = vmatmul.mubr.bf16.gmra.mrb[4].mxu1 %v544_v6  ;;  %2278 = vmatprep.mubr.bf16.mxu0 %v545_v17  ;;  %v2204_v18 = vpop.f32.mrb[8].mxu0 }
  0xf6   :  { %2279 = vmatmul.mubr.bf16.gmra.mrb[68].mxu0 %v546_v16  ;;  %787 = vmatprep.mubr.bf16.mxu1 %v2427_v43  ;;  %v329_v19 = vadd.f32 %v2204_v18, %v2774_v62  ;;  %v320_v20 = vpop.f32.mrb[9].mxu0 }
  0xf7   :  { %v321_v21 = vadd.f32 %v2774_v62, %v320_v20  ;;  %v2205_v22 = vpop.f32.mrb[10].mxu0 }
  0xf8   :  { %v332_v23 = vadd.f32 %v2205_v22, %v2774_v62  ;;  %v323_v24 = vpop.f32.mrb[11].mxu0 }
  0xf9   :  { %v324_v25 = vadd.f32 %v2774_v62, %v323_v24 }
  0xfa   :  { %v548_v26 = vpack.c.bf16 %v332_v23, %v329_v19 }
  0xfb   :  { %v547_v27 = vpack.c.bf16 %v324_v25, %v321_v21 }
  0xfd   :  { %788 = vmatmul.mubr.bf16.gmra.mrb[8].mxu1 %v545_v17  ;;  %2282 = vmatprep.mubr.bf16.mxu0 %v547_v27  ;;  %v2208_v28 = vpop.f32.mrb[12].mxu0 }
  0xfe   :  { %797 = vmatprep.mubr.bf16.mxu1 %v2427_v43  ;;  %2283 = vmatmul.mubr.bf16.gmra.mrb[72].mxu0 %v548_v26  ;;  %v345_v29 = vadd.f32 %v2208_v28, %v2774_v62  ;;  %v336_v30 = vpop.f32.mrb[13].mxu0 }
  0xff   :  { %v337_v31 = vadd.f32 %v2774_v62, %v336_v30  ;;  %v2209_v32 = vpop.f32.mrb[14].mxu0 }
 0x100   :  { %v348_v33 = vadd.f32 %v2209_v32, %v2774_v62  ;;  %v339_v34 = vpop.f32.mrb[15].mxu0 }
 0x101   :  { %v340_v35 = vadd.f32 %v2774_v62, %v339_v34 }
 0x102   :  { %v550_v36 = vpack.c.bf16 %v348_v33, %v345_v29 }
 0x103   :  { %v549_v37 = vpack.c.bf16 %v340_v35, %v337_v31 }
 0x105   :  { %798 = vmatmul.mubr.bf16.gmra.mrb[12].mxu1 %v546_v16  ;;  %2286 = vmatprep.mubr.bf16.mxu0 %v549_v37  ;;  %v2212_v38 = vpop.f32.mrb[16].mxu0 }
 0x106   :  { %807 = vmatprep.mubr.bf16.mxu1 %v2427_v43  ;;  %2287 = vmatmul.mubr.bf16.gmra.mrb[76].mxu0 %v550_v36  ;;  %v361_v39 = vadd.f32 %v2212_v38, %v2774_v62  ;;  %v352_v40 = vpop.f32.mrb[17].mxu0 }
 0x107   :  { %v353_v41 = vadd.f32 %v2774_v62, %v352_v40  ;;  %v2213_v42 = vpop.f32.mrb[18].mxu0 }
 0x108   :  { %v364_v44 = vadd.f32 %v2213_v42, %v2774_v62  ;;  %v355_v45 = vpop.f32.mrb[19].mxu0 }
 0x109   :  { %v356_v46 = vadd.f32 %v2774_v62, %v355_v45 }
 0x10a   :  { %v2800_v47 = vpack.c.bf16 %v364_v44, %v361_v39 }
 0x10b   :  { %v551_v48 = vpack.c.bf16 %v356_v46, %v353_v41 }
 0x10d   :  { %808 = vmatmul.mubr.bf16.gmra.mrb[16].mxu1 %v547_v27  ;;  %2290 = vmatprep.mubr.bf16.mxu0 %v551_v48  ;;  %v2216_v49 = vpop.f32.mrb[20].mxu0 }
 0x10e   :  { %817 = vmatprep.mubr.bf16.mxu1 %v2427_v43  ;;  %2291 = vmatmul.mubr.bf16.gmra.mrb[80].mxu0 %v2800_v47  ;;  %v377_v50 = vadd.f32 %v2216_v49, %v2774_v62  ;;  %v368_v51 = vpop.f32.mrb[21].mxu0 }
 0x10f   :  { %v369_v52 = vadd.f32 %v2774_v62, %v368_v51  ;;  %v2217_v53 = vpop.f32.mrb[22].mxu0 }
 0x110   :  { %v380_v54 = vadd.f32 %v2217_v53, %v2774_v62  ;;  %v371_v55 = vpop.f32.mrb[23].mxu0 }
 0x111   :  { %v372_v56 = vadd.f32 %v2774_v62, %v371_v55 }
 0x112   :  { %v2808_v57 = vpack.c.bf16 %v380_v54, %v377_v50 }
 0x113   :  { %v2810_v58 = vpack.c.bf16 %v372_v56, %v369_v52 }
 0x115   :  { %818 = vmatmul.mubr.bf16.gmra.mrb[20].mxu1 %v548_v26  ;;  %2294 = vmatprep.mubr.bf16.mxu0 %v2810_v58  ;;  %v2220_v59 = vpop.f32.mrb[24].mxu0 }
 0x116   :  { %827 = vmatprep.mubr.bf16.mxu1 %v2427_v43  ;;  %2295 = vmatmul.mubr.bf16.gmra.mrb[84].mxu0 %v2808_v57  ;;  %v393_v60 = vadd.f32 %v2220_v59, %v2774_v62  ;;  %v384_v61 = vpop.f32.mrb[25].mxu0 }
 0x117   :  { %v385_v63 = vadd.f32 %v2774_v62, %v384_v61  ;;  %v2221_v0 = vpop.f32.mrb[26].mxu0 }
 0x118   :  { %v396_v1 = vadd.f32 %v2221_v0, %v2774_v62  ;;  %v387_v2 = vpop.f32.mrb[27].mxu0 }
 0x119   :  { %v388_v3 = vadd.f32 %v2774_v62, %v387_v2 }
 0x11a   :  { %v2819_v4 = vpack.c.bf16 %v396_v1, %v393_v60 }
 0x11b   :  { %v2821_v5 = vpack.c.bf16 %v388_v3, %v385_v63 }
 0x11d   :  { %828 = vmatmul.mubr.bf16.gmra.mrb[24].mxu1 %v549_v37  ;;  %2298 = vmatprep.mubr.bf16.mxu0 %v2821_v5  ;;  %v2224_v6 = vpop.f32.mrb[28].mxu0 }
 0x11e   :  { %837 = vmatprep.mubr.bf16.mxu1 %v2427_v43  ;;  %2299 = vmatmul.mubr.bf16.gmra.mrb[88].mxu0 %v2819_v4  ;;  %v409_v7 = vadd.f32 %v2224_v6, %v2774_v62  ;;  %v400_v8 = vpop.f32.mrb[29].mxu0 }
 0x11f   :  { %v401_v9 = vadd.f32 %v2774_v62, %v400_v8  ;;  %v2225_v10 = vpop.f32.mrb[30].mxu0 }
 0x120   :  { %v412_v11 = vadd.f32 %v2225_v10, %v2774_v62  ;;  %v403_v12 = vpop.f32.mrb[31].mxu0 }
 0x121   :  { %v404_v13 = vadd.f32 %v2774_v62, %v403_v12 }
 0x122   :  { %v2830_v14 = vpack.c.bf16 %v412_v11, %v409_v7 }
 0x123   :  { %v2832_v15 = vpack.c.bf16 %v404_v13, %v401_v9 }
 0x125   :  { %838 = vmatmul.mubr.bf16.gmra.mrb[28].mxu1 %v550_v36  ;;  %2302 = vmatprep.mubr.bf16.mxu0 %v2832_v15  ;;  %v2228_v16 = vpop.f32.mrb[32].mxu0 }
 0x126   :  { %847 = vmatprep.mubr.bf16.mxu1 %v2427_v43  ;;  %2303 = vmatmul.mubr.bf16.gmra.mrb[92].mxu0 %v2830_v14  ;;  %v425_v17 = vadd.f32 %v2228_v16, %v2774_v62  ;;  %v416_v18 = vpop.f32.mrb[33].mxu0 }
 0x127   :  { %v417_v19 = vadd.f32 %v2774_v62, %v416_v18  ;;  %v2229_v20 = vpop.f32.mrb[34].mxu0 }
 0x128   :  { %v428_v21 = vadd.f32 %v2229_v20, %v2774_v62  ;;  %v419_v22 = vpop.f32.mrb[35].mxu0 }
 0x129   :  { %v420_v23 = vadd.f32 %v2774_v62, %v419_v22 }
 0x12a   :  { %v2841_v24 = vpack.c.bf16 %v428_v21, %v425_v17 }
 0x12b   :  { %v2843_v25 = vpack.c.bf16 %v420_v23, %v417_v19 }
 0x12d   :  { %848 = vmatmul.mubr.bf16.gmra.mrb[32].mxu1 %v551_v48  ;;  %2306 = vmatprep.mubr.bf16.mxu0 %v2843_v25  ;;  %v2232_v26 = vpop.f32.mrb[36].mxu0 }
 0x12e   :  { %857 = vmatprep.mubr.bf16.mxu1 %v2427_v43  ;;  %2307 = vmatmul.mubr.bf16.gmra.mrb[96].mxu0 %v2841_v24  ;;  %v441_v27 = vadd.f32 %v2232_v26, %v2774_v62  ;;  %v432_v28 = vpop.f32.mrb[37].mxu0 }
 0x12f   :  { %v433_v29 = vadd.f32 %v2774_v62, %v432_v28  ;;  %v2233_v30 = vpop.f32.mrb[38].mxu0 }
 0x130   :  { %v444_v31 = vadd.f32 %v2233_v30, %v2774_v62  ;;  %v435_v32 = vpop.f32.mrb[39].mxu0 }
 0x131   :  { %v436_v33 = vadd.f32 %v2774_v62, %v435_v32 }
 0x132   :  { %v2852_v34 = vpack.c.bf16 %v444_v31, %v441_v27 }
 0x133   :  { %v2854_v35 = vpack.c.bf16 %v436_v33, %v433_v29 }
 0x135   :  { %858 = vmatmul.mubr.bf16.gmra.mrb[36].mxu1 %v2800_v47  ;;  %2310 = vmatprep.mubr.bf16.mxu0 %v2854_v35  ;;  %v2236_v36 = vpop.f32.mrb[40].mxu0 }
 0x136   :  { %867 = vmatprep.mubr.bf16.mxu1 %v2427_v43  ;;  %2311 = vmatmul.mubr.bf16.gmra.mrb[100].mxu0 %v2852_v34  ;;  %v457_v37 = vadd.f32 %v2236_v36, %v2774_v62  ;;  %v448_v38 = vpop.f32.mrb[41].mxu0 }
 0x137   :  { %v449_v39 = vadd.f32 %v2774_v62, %v448_v38  ;;  %v2237_v40 = vpop.f32.mrb[42].mxu0 }
 0x138   :  { %v460_v41 = vadd.f32 %v2237_v40, %v2774_v62  ;;  %v451_v42 = vpop.f32.mrb[43].mxu0 }
 0x139   :  { %v452_v44 = vadd.f32 %v2774_v62, %v451_v42 }
 0x13a   :  { %v2864_v45 = vpack.c.bf16 %v460_v41, %v457_v37 }
 0x13b   :  { %v2866_v46 = vpack.c.bf16 %v452_v44, %v449_v39 }
 0x13d   :  { %868 = vmatmul.mubr.bf16.gmra.mrb[40].mxu1 %v2810_v58  ;;  %2314 = vmatprep.mubr.bf16.mxu0 %v2866_v46  ;;  %v2240_v47 = vpop.f32.mrb[44].mxu0 }
 0x13e   :  { %877 = vmatprep.mubr.bf16.mxu1 %v2427_v43  ;;  %2315 = vmatmul.mubr.bf16.gmra.mrb[104].mxu0 %v2864_v45  ;;  %v473_v48 = vadd.f32 %v2240_v47, %v2774_v62  ;;  %v464_v49 = vpop.f32.mrb[45].mxu0 }
 0x13f   :  { %v465_v50 = vadd.f32 %v2774_v62, %v464_v49  ;;  %v2241_v51 = vpop.f32.mrb[46].mxu0 }
 0x140   :  { %v476_v52 = vadd.f32 %v2241_v51, %v2774_v62  ;;  %v467_v53 = vpop.f32.mrb[47].mxu0 }
 0x141   :  { %v468_v54 = vadd.f32 %v2774_v62, %v467_v53 }
 0x142   :  { %v2876_v55 = vpack.c.bf16 %v476_v52, %v473_v48 }
 0x143   :  { %v2878_v56 = vpack.c.bf16 %v468_v54, %v465_v50 }
 0x145   :  { %878 = vmatmul.mubr.bf16.gmra.mrb[44].mxu1 %v2808_v57  ;;  %2318 = vmatprep.mubr.bf16.mxu0 %v2878_v56  ;;  %v2244_v58 = vpop.f32.mrb[48].mxu0 }
 0x146   :  { %887 = vmatprep.mubr.bf16.mxu1 %v2427_v43  ;;  %2319 = vmatmul.mubr.bf16.gmra.mrb[108].mxu0 %v2876_v55  ;;  %v489_v59 = vadd.f32 %v2244_v58, %v2774_v62  ;;  %v480_v60 = vpop.f32.mrb[49].mxu0 }
 0x147   :  { %v481_v61 = vadd.f32 %v2774_v62, %v480_v60  ;;  %v2245_v63 = vpop.f32.mrb[50].mxu0 }
 0x148   :  { %v492_v0 = vadd.f32 %v2245_v63, %v2774_v62  ;;  %v483_v1 = vpop.f32.mrb[51].mxu0 }
 0x149   :  { %v484_v2 = vadd.f32 %v2774_v62, %v483_v1 }
 0x14a   :  { %v2888_v3 = vpack.c.bf16 %v492_v0, %v489_v59 }
 0x14b   :  { %v567_v57 = vpack.c.bf16 %v484_v2, %v481_v61 }
 0x14d   :  { %888 = vmatmul.mubr.bf16.gmra.mrb[48].mxu1 %v2821_v5  ;;  %2322 = vmatprep.mubr.bf16.mxu0 %v567_v57  ;;  %v2248_v6 = vpop.f32.mrb[52].mxu0 }
 0x14e   :  { %897 = vmatprep.mubr.bf16.mxu1 %v2427_v43  ;;  %2323 = vmatmul.mubr.bf16.gmra.mrb[112].mxu0 %v2888_v3  ;;  %v505_v7 = vadd.f32 %v2248_v6, %v2774_v62  ;;  %v496_v8 = vpop.f32.mrb[53].mxu0 }
 0x14f   :  { %v497_v9 = vadd.f32 %v2774_v62, %v496_v8  ;;  %v2249_v10 = vpop.f32.mrb[54].mxu0 }
 0x150   :  { %v508_v11 = vadd.f32 %v2249_v10, %v2774_v62  ;;  %v499_v12 = vpop.f32.mrb[55].mxu0 }
 0x151   :  { %v500_v13 = vadd.f32 %v2774_v62, %v499_v12 }
 0x152   :  { %v2897_v16 = vpack.c.bf16 %v508_v11, %v505_v7 }
 0x153   :  { %v569_v5 = vpack.c.bf16 %v500_v13, %v497_v9 }
 0x155   :  { %898 = vmatmul.mubr.bf16.gmra.mrb[52].mxu1 %v2819_v4  ;;  %2326 = vmatprep.mubr.bf16.mxu0 %v569_v5  ;;  %v2252_v17 = vpop.f32.mrb[56].mxu0 }
 0x156   :  { %907 = vmatprep.mubr.bf16.mxu1 %v2427_v43  ;;  %2327 = vmatmul.mubr.bf16.gmra.mrb[116].mxu0 %v2897_v16  ;;  %v521_v18 = vadd.f32 %v2252_v17, %v2774_v62  ;;  %v512_v19 = vpop.f32.mrb[57].mxu0 }
 0x157   :  { %v513_v20 = vadd.f32 %v2774_v62, %v512_v19  ;;  %v2253_v21 = vpop.f32.mrb[58].mxu0 }
 0x158   :  { %v524_v22 = vadd.f32 %v2253_v21, %v2774_v62  ;;  %v515_v23 = vpop.f32.mrb[59].mxu0 }
 0x159   :  { %v516_v26 = vadd.f32 %v2774_v62, %v515_v23 }
 0x15a   :  { %v2906_v27 = vpack.c.bf16 %v524_v22, %v521_v18 }
 0x15b   :  { %v2908_v4 = vpack.c.bf16 %v516_v26, %v513_v20 }
 0x15d   :  { %908 = vmatmul.mubr.bf16.gmra.mrb[56].mxu1 %v2832_v15  ;;  %v2256_v28 = vpop.f32.mrb[60].mxu0  ;;  %2330 = vmatprep.mubr.bf16.mxu0 %v2908_v4 }
 0x15e   :  { %917 = vmatprep.mubr.bf16.mxu1 %v2427_v43  ;;  %v537_v29 = vadd.f32 %v2256_v28, %v2774_v62  ;;  %v528_v30 = vpop.f32.mrb[61].mxu0  ;;  %2331 = vmatmul.mubr.bf16.gmra.mrb[120].mxu0 %v2906_v27 }
 0x15f   :  { %v529_v31 = vadd.f32 %v2774_v62, %v528_v30  ;;  %v2257_v32 = vpop.f32.mrb[62].mxu0 }
 0x160   :  { %v540_v33 = vadd.f32 %v2257_v32, %v2774_v62  ;;  %v531_v36 = vpop.f32.mrb[63].mxu0 }
 0x161   :  { %v532_v37 = vadd.f32 %v2774_v62, %v531_v36 }
 0x162   :  { %v2918_v38 = vpack.c.bf16 %v540_v33, %v537_v29 }
 0x163   :  { %v2920_v15 = vpack.c.bf16 %v532_v37, %v529_v31 }
 0x165   :  { %918 = vmatmul.mubr.bf16.gmra.mrb[60].mxu1 %v2830_v14  ;;  %2334 = vmatprep.mubr.bf16.mxu0 %v2920_v15 }
 0x166   :  { %927 = vmatprep.mubr.bf16.mxu1 %v2427_v43  ;;  %2335 = vmatmul.mubr.bf16.gmra.mrb[124].mxu0 %v2918_v38 }
 0x16d   :  { %928 = vmatmul.mubr.bf16.gmra.mrb[64].mxu1 %v2843_v25 }
 0x16e   :  { %937 = vmatprep.mubr.bf16.mxu1 %v2427_v43 }
 0x175   :  { %938 = vmatmul.mubr.bf16.gmra.mrb[68].mxu1 %v2841_v24 }
 0x176   :  { %947 = vmatprep.mubr.bf16.mxu1 %v2427_v43 }
 0x17d   :  { %948 = vmatmul.mubr.bf16.gmra.mrb[72].mxu1 %v2854_v35 }
 0x17e   :  { %957 = vmatprep.mubr.bf16.mxu1 %v2427_v43 }
 0x185   :  { %958 = vmatmul.mubr.bf16.gmra.mrb[76].mxu1 %v2852_v34 }
 0x186   :  { %967 = vmatprep.mubr.bf16.mxu1 %v2427_v43 }
 0x18d   :  { %968 = vmatmul.mubr.bf16.gmra.mrb[80].mxu1 %v2866_v46 }
 0x18e   :  { %977 = vmatprep.mubr.bf16.mxu1 %v2427_v43 }
 0x195   :  { %978 = vmatmul.mubr.bf16.gmra.mrb[84].mxu1 %v2864_v45 }
 0x196   :  { %987 = vmatprep.mubr.bf16.mxu1 %v2427_v43 }
 0x19d   :  { %988 = vmatmul.mubr.bf16.gmra.mrb[88].mxu1 %v2878_v56 }
 0x19e   :  { %997 = vmatprep.mubr.bf16.mxu1 %v2427_v43 }
 0x1a5   :  { %998 = vmatmul.mubr.bf16.gmra.mrb[92].mxu1 %v2876_v55 }
 0x1a6   :  { %1007 = vmatprep.mubr.bf16.mxu1 %v2427_v43 }
 0x1ad   :  { %1008 = vmatmul.mubr.bf16.gmra.mrb[96].mxu1 %v567_v57 }
 0x1ae   :  { %1017 = vmatprep.mubr.bf16.mxu1 %v2427_v43 }
 0x1b5   :  { %1018 = vmatmul.mubr.bf16.gmra.mrb[100].mxu1 %v2888_v3 }
 0x1b6   :  { %1027 = vmatprep.mubr.bf16.mxu1 %v2427_v43 }
 0x1bd   :  { %1028 = vmatmul.mubr.bf16.gmra.mrb[104].mxu1 %v569_v5 }
 0x1be   :  { %1037 = vmatprep.mubr.bf16.mxu1 %v2427_v43 }
 0x1c0   :  { %v769_v62 = vpop.f32.mrb[0].mxu1 }
 0x1c1   :  { %1377 = vst [vmem:[#allocation2] sm:$0xff] %v769_v62  ;;  %v771_v14 = vpop.f32.mrb[1].mxu1  ;;  %v2276_v24 = vpop.f32.mrb[64].mxu0 }
 0x1c2   :  { %v773_v25 = vpop.f32.mrb[2].mxu1  ;;  %v1122_v34 = vpop.f32.mrb[65].mxu0 }
 0x1c3   :  { %1378 = vst [vmem:[#allocation2 + $0x8] sm:$0xff] %v773_v25  ;;  %v2046_v35 = vpack.c.bf16 %v1122_v34, %v771_v14  ;;  %v775_v39 = vpop.f32.mrb[3].mxu1  ;;  %v2277_v40 = vpop.f32.mrb[66].mxu0 }
 0x1c4   :  { %v1125_v41 = vpop.f32.mrb[67].mxu0 }
 0x1c5   :  { %1825 = vst [vmem:[#allocation4] sm:$0xff] %v2046_v35  ;;  %v2047_v42 = vpack.c.bf16 %v1125_v41, %v775_v39  ;;  %1038 = vmatmul.mubr.bf16.gmra.mrb[108].mxu1 %v2897_v16 }
 0x1c6   :  { %1047 = vmatprep.mubr.bf16.mxu1 %v2427_v43 }
 0x1c7   :  { %1826 = vst [vmem:[#allocation4 + $0x8] sm:$0xff] %v2047_v42 }
 0x1c8   :  { %v779_v44 = vpop.f32.mrb[4].mxu1 }
 0x1c9   :  { %1379 = vst [vmem:[#allocation2 + $0x10] sm:$0xff] %v779_v44  ;;  %v781_v45 = vpop.f32.mrb[5].mxu1  ;;  %v2280_v46 = vpop.f32.mrb[68].mxu0 }
 0x1ca   :  { %v2048_v47 = vpack.c.bf16 %v2276_v24, %v781_v45  ;;  %v783_v48 = vpop.f32.mrb[6].mxu1  ;;  %v1138_v49 = vpop.f32.mrb[69].mxu0 }
 0x1cb   :  { %1380 = vst [vmem:[#allocation2 + $0x18] sm:$0xff] %v783_v48  ;;  %v785_v50 = vpop.f32.mrb[7].mxu1  ;;  %v2281_v51 = vpop.f32.mrb[70].mxu0 }
 0x1cc   :  { %1827 = vst [vmem:[#allocation4 + $0x10] sm:$0xff] %v2048_v47  ;;  %v2049_v52 = vpack.c.bf16 %v2277_v40, %v785_v50  ;;  %v1141_v53 = vpop.f32.mrb[71].mxu0 }
 0x1cd   :  { %1048 = vmatmul.mubr.bf16.gmra.mrb[112].mxu1 %v2908_v4 }
 0x1ce   :  { %1828 = vst [vmem:[#allocation4 + $0x18] sm:$0xff] %v2049_v52  ;;  %1057 = vmatprep.mubr.bf16.mxu1 %v2427_v43 }
 0x1d0   :  { %v789_v54 = vpop.f32.mrb[8].mxu1 }
 0x1d1   :  { %1381 = vst [vmem:[#allocation2 + $0x20] sm:$0xff] %v789_v54  ;;  %v791_v55 = vpop.f32.mrb[9].mxu1  ;;  %v2284_v56 = vpop.f32.mrb[72].mxu0 }
 0x1d2   :  { %v2050_v58 = vpack.c.bf16 %v1138_v49, %v791_v55  ;;  %v793_v59 = vpop.f32.mrb[10].mxu1  ;;  %v1154_v60 = vpop.f32.mrb[73].mxu0 }
 0x1d3   :  { %1382 = vst [vmem:[#allocation2 + $0x28] sm:$0xff] %v793_v59  ;;  %v795_v61 = vpop.f32.mrb[11].mxu1  ;;  %v2285_v63 = vpop.f32.mrb[74].mxu0 }
 0x1d4   :  { %1829 = vst [vmem:[#allocation4 + $0x20] sm:$0xff] %v2050_v58  ;;  %v2051_v0 = vpack.c.bf16 %v1141_v53, %v795_v61  ;;  %v1157_v1 = vpop.f32.mrb[75].mxu0 }
 0x1d5   :  { %1058 = vmatmul.mubr.bf16.gmra.mrb[116].mxu1 %v2906_v27 }
 0x1d6   :  { %1830 = vst [vmem:[#allocation4 + $0x28] sm:$0xff] %v2051_v0  ;;  %1067 = vmatprep.mubr.bf16.mxu1 %v2427_v43 }
 0x1d8   :  { %v799_v2 = vpop.f32.mrb[12].mxu1 }
 0x1d9   :  { %1383 = vst [vmem:[#allocation2 + $0x30] sm:$0xff] %v799_v2  ;;  %v801_v3 = vpop.f32.mrb[13].mxu1  ;;  %v2952_v57 = vpop.f32.mrb[76].mxu0 }
 0x1da   :  { %v2052_v6 = vpack.c.bf16 %v2280_v46, %v801_v3  ;;  %v803_v7 = vpop.f32.mrb[14].mxu1  ;;  %v1170_v8 = vpop.f32.mrb[77].mxu0 }
 0x1db   :  { %1384 = vst [vmem:[#allocation2 + $0x38] sm:$0xff] %v803_v7  ;;  %v805_v9 = vpop.f32.mrb[15].mxu1  ;;  %v2954_v10 = vpop.f32.mrb[78].mxu0 }
 0x1dc   :  { %1831 = vst [vmem:[#allocation4 + $0x30] sm:$0xff] %v2052_v6  ;;  %v2053_v11 = vpack.c.bf16 %v2281_v51, %v805_v9  ;;  %v1173_v12 = vpop.f32.mrb[79].mxu0 }
 0x1dd   :  { %1068 = vmatmul.mubr.bf16.gmra.mrb[120].mxu1 %v2920_v15 }
 0x1de   :  { %1832 = vst [vmem:[#allocation4 + $0x38] sm:$0xff] %v2053_v11  ;;  %1077 = vmatprep.mubr.bf16.mxu1 %v2427_v43 }
 0x1e0   :  { %v809_v13 = vpop.f32.mrb[16].mxu1 }
 0x1e1   :  { %1385 = vst [vmem:[#allocation2 + $0x40] sm:$0xff] %v809_v13  ;;  %v811_v16 = vpop.f32.mrb[17].mxu1  ;;  %v2958_v5 = vpop.f32.mrb[80].mxu0 }
 0x1e2   :  { %v2054_v17 = vpack.c.bf16 %v1154_v60, %v811_v16  ;;  %v813_v18 = vpop.f32.mrb[18].mxu1  ;;  %v1186_v19 = vpop.f32.mrb[81].mxu0 }
 0x1e3   :  { %1386 = vst [vmem:[#allocation2 + $0x48] sm:$0xff] %v813_v18  ;;  %v815_v20 = vpop.f32.mrb[19].mxu1  ;;  %v2960_v21 = vpop.f32.mrb[82].mxu0 }
 0x1e4   :  { %1833 = vst [vmem:[#allocation4 + $0x40] sm:$0xff] %v2054_v17  ;;  %v2055_v22 = vpack.c.bf16 %v1157_v1, %v815_v20  ;;  %v1189_v23 = vpop.f32.mrb[83].mxu0 }
 0x1e5   :  { %1078 = vmatmul.mubr.bf16.gmra.mrb[124].mxu1 %v2918_v38 }
 0x1e6   :  { %1834 = vst [vmem:[#allocation4 + $0x48] sm:$0xff] %v2055_v22 }
 0x1e8   :  { %v819_v26 = vpop.f32.mrb[20].mxu1 }
 0x1e9   :  { %1387 = vst [vmem:[#allocation2 + $0x50] sm:$0xff] %v819_v26  ;;  %v821_v43 = vpop.f32.mrb[21].mxu1  ;;  %v2963_v27 = vpop.f32.mrb[84].mxu0 }
 0x1ea   :  { %v2056_v4 = vpack.c.bf16 %v2284_v56, %v821_v43  ;;  %v823_v28 = vpop.f32.mrb[22].mxu1  ;;  %v2965_v29 = vpop.f32.mrb[85].mxu0 }
 0x1eb   :  { %1388 = vst [vmem:[#allocation2 + $0x58] sm:$0xff] %v823_v28  ;;  %v825_v30 = vpop.f32.mrb[23].mxu1  ;;  %v2967_v31 = vpop.f32.mrb[86].mxu0 }
 0x1ec   :  { %1835 = vst [vmem:[#allocation4 + $0x50] sm:$0xff] %v2056_v4  ;;  %v2057_v32 = vpack.c.bf16 %v2285_v63, %v825_v30  ;;  %v2969_v33 = vpop.f32.mrb[87].mxu0 }
 0x1ee   :  { %1836 = vst [vmem:[#allocation4 + $0x58] sm:$0xff] %v2057_v32 }
 0x1f0   :  { %v829_v36 = vpop.f32.mrb[24].mxu1 }
 0x1f1   :  { %1389 = vst [vmem:[#allocation2 + $0x60] sm:$0xff] %v829_v36  ;;  %v831_v37 = vpop.f32.mrb[25].mxu1  ;;  %v2971_v38 = vpop.f32.mrb[88].mxu0 }
 0x1f2   :  { %v2058_v15 = vpack.c.bf16 %v1170_v8, %v831_v37  ;;  %v833_v62 = vpop.f32.mrb[26].mxu1  ;;  %v2973_v14 = vpop.f32.mrb[89].mxu0 }
 0x1f3   :  { %1390 = vst [vmem:[#allocation2 + $0x68] sm:$0xff] %v833_v62  ;;  %v835_v24 = vpop.f32.mrb[27].mxu1  ;;  %v2975_v25 = vpop.f32.mrb[90].mxu0 }
 0x1f4   :  { %1837 = vst [vmem:[#allocation4 + $0x60] sm:$0xff] %v2058_v15  ;;  %v2059_v34 = vpack.c.bf16 %v1173_v12, %v835_v24  ;;  %v2977_v35 = vpop.f32.mrb[91].mxu0 }
 0x1f6   :  { %1838 = vst [vmem:[#allocation4 + $0x68] sm:$0xff] %v2059_v34 }
 0x1f8   :  { %v839_v39 = vpop.f32.mrb[28].mxu1 }
 0x1f9   :  { %1391 = vst [vmem:[#allocation2 + $0x70] sm:$0xff] %v839_v39  ;;  %v841_v40 = vpop.f32.mrb[29].mxu1  ;;  %v2979_v41 = vpop.f32.mrb[92].mxu0 }
 0x1fa   :  { %v2060_v42 = vpack.c.bf16 %v2952_v57, %v841_v40  ;;  %v843_v44 = vpop.f32.mrb[30].mxu1  ;;  %v2982_v45 = vpop.f32.mrb[93].mxu0 }
 0x1fb   :  { %1392 = vst [vmem:[#allocation2 + $0x78] sm:$0xff] %v843_v44  ;;  %v845_v46 = vpop.f32.mrb[31].mxu1  ;;  %v2984_v47 = vpop.f32.mrb[94].mxu0 }
 0x1fc   :  { %1839 = vst [vmem:[#allocation4 + $0x70] sm:$0xff] %v2060_v42  ;;  %v2061_v48 = vpack.c.bf16 %v2954_v10, %v845_v46  ;;  %v2987_v49 = vpop.f32.mrb[95].mxu0 }
 0x1fe   :  { %1840 = vst [vmem:[#allocation4 + $0x78] sm:$0xff] %v2061_v48 }
 0x200   :  { %v849_v50 = vpop.f32.mrb[32].mxu1 }
 0x201   :  { %1393 = vst [vmem:[#allocation2 + $0x80] sm:$0xff] %v849_v50  ;;  %v851_v51 = vpop.f32.mrb[33].mxu1  ;;  %v2989_v52 = vpop.f32.mrb[96].mxu0 }
 0x202   :  { %v2062_v53 = vpack.c.bf16 %v1186_v19, %v851_v51  ;;  %v853_v54 = vpop.f32.mrb[34].mxu1  ;;  %v2991_v55 = vpop.f32.mrb[97].mxu0 }
 0x203   :  { %1394 = vst [vmem:[#allocation2 + $0x88] sm:$0xff] %v853_v54  ;;  %v855_v56 = vpop.f32.mrb[35].mxu1  ;;  %v2993_v58 = vpop.f32.mrb[98].mxu0 }
 0x204   :  { %1841 = vst [vmem:[#allocation4 + $0x80] sm:$0xff] %v2062_v53  ;;  %v2063_v59 = vpack.c.bf16 %v1189_v23, %v855_v56  ;;  %v2995_v60 = vpop.f32.mrb[99].mxu0 }
 0x206   :  { %1842 = vst [vmem:[#allocation4 + $0x88] sm:$0xff] %v2063_v59 }
 0x208   :  { %v859_v61 = vpop.f32.mrb[36].mxu1 }
 0x209   :  { %1395 = vst [vmem:[#allocation2 + $0x90] sm:$0xff] %v859_v61  ;;  %v861_v63 = vpop.f32.mrb[37].mxu1  ;;  %v2997_v0 = vpop.f32.mrb[100].mxu0 }
 0x20a   :  { %v2064_v1 = vpack.c.bf16 %v2958_v5, %v861_v63  ;;  %v863_v2 = vpop.f32.mrb[38].mxu1  ;;  %v3000_v3 = vpop.f32.mrb[101].mxu0 }
 0x20b   :  { %1396 = vst [vmem:[#allocation2 + $0x98] sm:$0xff] %v863_v2  ;;  %v865_v57 = vpop.f32.mrb[39].mxu1  ;;  %v3002_v6 = vpop.f32.mrb[102].mxu0 }
 0x20c   :  { %1843 = vst [vmem:[#allocation4 + $0x90] sm:$0xff] %v2064_v1  ;;  %v2065_v7 = vpack.c.bf16 %v2960_v21, %v865_v57  ;;  %v3005_v8 = vpop.f32.mrb[103].mxu0 }
 0x20e   :  { %1844 = vst [vmem:[#allocation4 + $0x98] sm:$0xff] %v2065_v7 }
 0x210   :  { %v869_v9 = vpop.f32.mrb[40].mxu1 }
 0x211   :  { %1397 = vst [vmem:[#allocation2 + $0xa0] sm:$0xff] %v869_v9  ;;  %v871_v10 = vpop.f32.mrb[41].mxu1  ;;  %v3007_v11 = vpop.f32.mrb[104].mxu0 }
 0x212   :  { %v2066_v12 = vpack.c.bf16 %v2965_v29, %v871_v10  ;;  %v873_v13 = vpop.f32.mrb[42].mxu1  ;;  %v3010_v16 = vpop.f32.mrb[105].mxu0 }
 0x213   :  { %1398 = vst [vmem:[#allocation2 + $0xa8] sm:$0xff] %v873_v13  ;;  %v875_v5 = vpop.f32.mrb[43].mxu1  ;;  %v3012_v17 = vpop.f32.mrb[106].mxu0 }
 0x214   :  { %1845 = vst [vmem:[#allocation4 + $0xa0] sm:$0xff] %v2066_v12  ;;  %v2067_v18 = vpack.c.bf16 %v2969_v33, %v875_v5  ;;  %v3015_v19 = vpop.f32.mrb[107].mxu0 }
 0x216   :  { %1846 = vst [vmem:[#allocation4 + $0xa8] sm:$0xff] %v2067_v18 }
 0x218   :  { %v879_v20 = vpop.f32.mrb[44].mxu1 }
 0x219   :  { %1399 = vst [vmem:[#allocation2 + $0xb0] sm:$0xff] %v879_v20  ;;  %v881_v21 = vpop.f32.mrb[45].mxu1  ;;  %v3017_v22 = vpop.f32.mrb[108].mxu0 }
 0x21a   :  { %v2068_v23 = vpack.c.bf16 %v2963_v27, %v881_v21  ;;  %v883_v26 = vpop.f32.mrb[46].mxu1  ;;  %v3020_v43 = vpop.f32.mrb[109].mxu0 }
 0x21b   :  { %1400 = vst [vmem:[#allocation2 + $0xb8] sm:$0xff] %v883_v26  ;;  %v885_v4 = vpop.f32.mrb[47].mxu1  ;;  %v3022_v28 = vpop.f32.mrb[110].mxu0 }
 0x21c   :  { %1847 = vst [vmem:[#allocation4 + $0xb0] sm:$0xff] %v2068_v23  ;;  %v2069_v29 = vpack.c.bf16 %v2967_v31, %v885_v4  ;;  %v3025_v30 = vpop.f32.mrb[111].mxu0 }
 0x21e   :  { %1848 = vst [vmem:[#allocation4 + $0xb8] sm:$0xff] %v2069_v29 }
 0x220   :  { %v889_v32 = vpop.f32.mrb[48].mxu1 }
 0x221   :  { %1401 = vst [vmem:[#allocation2 + $0xc0] sm:$0xff] %v889_v32  ;;  %v891_v33 = vpop.f32.mrb[49].mxu1  ;;  %v3027_v36 = vpop.f32.mrb[112].mxu0 }
 0x222   :  { %v2070_v27 = vpack.c.bf16 %v2973_v14, %v891_v33  ;;  %v893_v37 = vpop.f32.mrb[50].mxu1  ;;  %v3030_v15 = vpop.f32.mrb[113].mxu0 }
 0x223   :  { %1402 = vst [vmem:[#allocation2 + $0xc8] sm:$0xff] %v893_v37  ;;  %v895_v62 = vpop.f32.mrb[51].mxu1  ;;  %v3032_v24 = vpop.f32.mrb[114].mxu0 }
 0x224   :  { %1849 = vst [vmem:[#allocation4 + $0xc0] sm:$0xff] %v2070_v27  ;;  %v2071_v31 = vpack.c.bf16 %v2977_v35, %v895_v62  ;;  %v3035_v34 = vpop.f32.mrb[115].mxu0 }
 0x226   :  { %1850 = vst [vmem:[#allocation4 + $0xc8] sm:$0xff] %v2071_v31 }
 0x228   :  { %v899_v39 = vpop.f32.mrb[52].mxu1 }
 0x229   :  { %1403 = vst [vmem:[#allocation2 + $0xd0] sm:$0xff] %v899_v39  ;;  %v901_v40 = vpop.f32.mrb[53].mxu1  ;;  %v3037_v42 = vpop.f32.mrb[116].mxu0 }
 0x22a   :  { %v2072_v14 = vpack.c.bf16 %v2971_v38, %v901_v40  ;;  %v903_v44 = vpop.f32.mrb[54].mxu1  ;;  %v3040_v46 = vpop.f32.mrb[117].mxu0 }
 0x22b   :  { %1404 = vst [vmem:[#allocation2 + $0xd8] sm:$0xff] %v903_v44  ;;  %v905_v48 = vpop.f32.mrb[55].mxu1  ;;  %v3042_v50 = vpop.f32.mrb[118].mxu0 }
 0x22c   :  { %1851 = vst [vmem:[#allocation4 + $0xd0] sm:$0xff] %v2072_v14  ;;  %v2073_v35 = vpack.c.bf16 %v2975_v25, %v905_v48  ;;  %v3045_v51 = vpop.f32.mrb[119].mxu0 }
 0x22e   :  { %1852 = vst [vmem:[#allocation4 + $0xd8] sm:$0xff] %v2073_v35 }
 0x230   :  { %v909_v53 = vpop.f32.mrb[56].mxu1 }
 0x231   :  { %1405 = vst [vmem:[#allocation2 + $0xe0] sm:$0xff] %v909_v53  ;;  %v911_v54 = vpop.f32.mrb[57].mxu1  ;;  %v3047_v56 = vpop.f32.mrb[120].mxu0 }
 0x232   :  { %v2074_v38 = vpack.c.bf16 %v2982_v45, %v911_v54  ;;  %v913_v59 = vpop.f32.mrb[58].mxu1  ;;  %v3050_v61 = vpop.f32.mrb[121].mxu0 }
 0x233   :  { %1406 = vst [vmem:[#allocation2 + $0xe8] sm:$0xff] %v913_v59  ;;  %v915_v63 = vpop.f32.mrb[59].mxu1  ;;  %v3052_v1 = vpop.f32.mrb[122].mxu0 }
 0x234   :  { %1853 = vst [vmem:[#allocation4 + $0xe0] sm:$0xff] %v2074_v38  ;;  %v2075_v25 = vpack.c.bf16 %v2987_v49, %v915_v63  ;;  %v3055_v2 = vpop.f32.mrb[123].mxu0 }
 0x236   :  { %1854 = vst [vmem:[#allocation4 + $0xe8] sm:$0xff] %v2075_v25 }
 0x238   :  { %v919_v57 = vpop.f32.mrb[60].mxu1 }
 0x239   :  { %1407 = vst [vmem:[#allocation2 + $0xf0] sm:$0xff] %v919_v57  ;;  %v921_v7 = vpop.f32.mrb[61].mxu1  ;;  %v3057_v9 = vpop.f32.mrb[124].mxu0 }
 0x23a   :  { %v2076_v45 = vpack.c.bf16 %v2979_v41, %v921_v7  ;;  %v923_v10 = vpop.f32.mrb[62].mxu1  ;;  %v3060_v12 = vpop.f32.mrb[125].mxu0 }
 0x23b   :  { %1408 = vst [vmem:[#allocation2 + $0xf8] sm:$0xff] %v923_v10  ;;  %v925_v13 = vpop.f32.mrb[63].mxu1  ;;  %v3062_v5 = vpop.f32.mrb[126].mxu0 }
 0x23c   :  { %1855 = vst [vmem:[#allocation4 + $0xf0] sm:$0xff] %v2076_v45  ;;  %v2077_v49 = vpack.c.bf16 %v2984_v47, %v925_v13  ;;  %v3065_v18 = vpop.f32.mrb[127].mxu0 }
 0x23e   :  { %1856 = vst [vmem:[#allocation4 + $0xf8] sm:$0xff] %v2077_v49 }
 0x240   :  { %v929_v20 = vpop.f32.mrb[64].mxu1 }
 0x241   :  { %1409 = vst [vmem:[#allocation2 + $0x100] sm:$0xff] %v929_v20  ;;  %v931_v21 = vpop.f32.mrb[65].mxu1 }
 0x242   :  { %v2078_v23 = vpack.c.bf16 %v2991_v55, %v931_v21  ;;  %v933_v26 = vpop.f32.mrb[66].mxu1 }
 0x243   :  { %1410 = vst [vmem:[#allocation2 + $0x108] sm:$0xff] %v933_v26  ;;  %v935_v41 = vpop.f32.mrb[67].mxu1 }
 0x244   :  { %1857 = vst [vmem:[#allocation4 + $0x100] sm:$0xff] %v2078_v23  ;;  %v2079_v4 = vpack.c.bf16 %v2995_v60, %v935_v41 }
 0x246   :  { %1858 = vst [vmem:[#allocation4 + $0x108] sm:$0xff] %v2079_v4 }
 0x248   :  { %v939_v29 = vpop.f32.mrb[68].mxu1 }
 0x249   :  { %1411 = vst [vmem:[#allocation2 + $0x110] sm:$0xff] %v939_v29  ;;  %v941_v32 = vpop.f32.mrb[69].mxu1 }
 0x24a   :  { %v2080_v47 = vpack.c.bf16 %v2989_v52, %v941_v32  ;;  %v943_v33 = vpop.f32.mrb[70].mxu1 }
 0x24b   :  { %1412 = vst [vmem:[#allocation2 + $0x118] sm:$0xff] %v943_v33  ;;  %v945_v27 = vpop.f32.mrb[71].mxu1 }
 0x24c   :  { %1859 = vst [vmem:[#allocation4 + $0x110] sm:$0xff] %v2080_v47  ;;  %v2081_v37 = vpack.c.bf16 %v2993_v58, %v945_v27 }
 0x24e   :  { %1860 = vst [vmem:[#allocation4 + $0x118] sm:$0xff] %v2081_v37 }
 0x250   :  { %v949_v55 = vpop.f32.mrb[72].mxu1 }
 0x251   :  { %1413 = vst [vmem:[#allocation2 + $0x120] sm:$0xff] %v949_v55  ;;  %v951_v62 = vpop.f32.mrb[73].mxu1 }
 0x252   :  { %v2082_v31 = vpack.c.bf16 %v3000_v3, %v951_v62  ;;  %v953_v39 = vpop.f32.mrb[74].mxu1 }
 0x253   :  { %1414 = vst [vmem:[#allocation2 + $0x128] sm:$0xff] %v953_v39  ;;  %v955_v60 = vpop.f32.mrb[75].mxu1 }
 0x254   :  { %1861 = vst [vmem:[#allocation4 + $0x120] sm:$0xff] %v2082_v31  ;;  %v2083_v40 = vpack.c.bf16 %v3005_v8, %v955_v60 }
 0x256   :  { %1862 = vst [vmem:[#allocation4 + $0x128] sm:$0xff] %v2083_v40 }
 0x258   :  { %v959_v52 = vpop.f32.mrb[76].mxu1 }
 0x259   :  { %1415 = vst [vmem:[#allocation2 + $0x130] sm:$0xff] %v959_v52  ;;  %v961_v14 = vpop.f32.mrb[77].mxu1 }
 0x25a   :  { %v2084_v44 = vpack.c.bf16 %v2997_v0, %v961_v14  ;;  %v963_v48 = vpop.f32.mrb[78].mxu1 }
 0x25b   :  { %1416 = vst [vmem:[#allocation2 + $0x138] sm:$0xff] %v963_v48  ;;  %v965_v58 = vpop.f32.mrb[79].mxu1 }
 0x25c   :  { %1863 = vst [vmem:[#allocation4 + $0x130] sm:$0xff] %v2084_v44  ;;  %v2085_v35 = vpack.c.bf16 %v3002_v6, %v965_v58 }
 0x25e   :  { %1864 = vst [vmem:[#allocation4 + $0x138] sm:$0xff] %v2085_v35 }
 0x260   :  { %v969_v3 = vpop.f32.mrb[80].mxu1 }
 0x261   :  { %1417 = vst [vmem:[#allocation2 + $0x140] sm:$0xff] %v969_v3  ;;  %v971_v53 = vpop.f32.mrb[81].mxu1 }
 0x262   :  { %v2086_v54 = vpack.c.bf16 %v3010_v16, %v971_v53  ;;  %v973_v38 = vpop.f32.mrb[82].mxu1 }
 0x263   :  { %1418 = vst [vmem:[#allocation2 + $0x148] sm:$0xff] %v973_v38  ;;  %v975_v8 = vpop.f32.mrb[83].mxu1 }
 0x264   :  { %1865 = vst [vmem:[#allocation4 + $0x140] sm:$0xff] %v2086_v54  ;;  %v2087_v59 = vpack.c.bf16 %v3015_v19, %v975_v8 }
 0x266   :  { %1866 = vst [vmem:[#allocation4 + $0x148] sm:$0xff] %v2087_v59 }
 0x268   :  { %v979_v0 = vpop.f32.mrb[84].mxu1 }
 0x269   :  { %1419 = vst [vmem:[#allocation2 + $0x150] sm:$0xff] %v979_v0  ;;  %v981_v63 = vpop.f32.mrb[85].mxu1 }
 0x26a   :  { %v2088_v25 = vpack.c.bf16 %v3007_v11, %v981_v63  ;;  %v983_v57 = vpop.f32.mrb[86].mxu1 }
 0x26b   :  { %1420 = vst [vmem:[#allocation2 + $0x158] sm:$0xff] %v983_v57  ;;  %v985_v6 = vpop.f32.mrb[87].mxu1 }
 0x26c   :  { %1867 = vst [vmem:[#allocation4 + $0x150] sm:$0xff] %v2088_v25  ;;  %v2089_v7 = vpack.c.bf16 %v3012_v17, %v985_v6 }
 0x26e   :  { %1868 = vst [vmem:[#allocation4 + $0x158] sm:$0xff] %v2089_v7 }
 0x270   :  { %v989_v16 = vpop.f32.mrb[88].mxu1 }
 0x271   :  { %1421 = vst [vmem:[#allocation2 + $0x160] sm:$0xff] %v989_v16  ;;  %v991_v45 = vpop.f32.mrb[89].mxu1 }
 0x272   :  { %v2090_v10 = vpack.c.bf16 %v3020_v43, %v991_v45  ;;  %v993_v13 = vpop.f32.mrb[90].mxu1 }
 0x273   :  { %1422 = vst [vmem:[#allocation2 + $0x168] sm:$0xff] %v993_v13  ;;  %v995_v19 = vpop.f32.mrb[91].mxu1 }
 0x274   :  { %1869 = vst [vmem:[#allocation4 + $0x160] sm:$0xff] %v2090_v10  ;;  %v2091_v49 = vpack.c.bf16 %v3025_v30, %v995_v19 }
 0x276   :  { %1870 = vst [vmem:[#allocation4 + $0x168] sm:$0xff] %v2091_v49 }
 0x278   :  { %v999_v11 = vpop.f32.mrb[92].mxu1 }
 0x279   :  { %1423 = vst [vmem:[#allocation2 + $0x170] sm:$0xff] %v999_v11  ;;  %v1001_v20 = vpop.f32.mrb[93].mxu1 }
 0x27a   :  { %v2092_v21 = vpack.c.bf16 %v3017_v22, %v1001_v20  ;;  %v1003_v23 = vpop.f32.mrb[94].mxu1 }
 0x27b   :  { %1424 = vst [vmem:[#allocation2 + $0x178] sm:$0xff] %v1003_v23  ;;  %v1005_v17 = vpop.f32.mrb[95].mxu1 }
 0x27c   :  { %1871 = vst [vmem:[#allocation4 + $0x170] sm:$0xff] %v2092_v21  ;;  %v2093_v26 = vpack.c.bf16 %v3022_v28, %v1005_v17 }
 0x27e   :  { %1872 = vst [vmem:[#allocation4 + $0x178] sm:$0xff] %v2093_v26 }
 0x280   :  { %v1009_v43 = vpop.f32.mrb[96].mxu1 }
 0x281   :  { %1425 = vst [vmem:[#allocation2 + $0x180] sm:$0xff] %v1009_v43  ;;  %v1011_v41 = vpop.f32.mrb[97].mxu1 }
 0x282   :  { %v2094_v4 = vpack.c.bf16 %v3030_v15, %v1011_v41  ;;  %v1013_v29 = vpop.f32.mrb[98].mxu1 }
 0x283   :  { %1426 = vst [vmem:[#allocation2 + $0x188] sm:$0xff] %v1013_v29  ;;  %v1015_v30 = vpop.f32.mrb[99].mxu1 }
 0x284   :  { %1873 = vst [vmem:[#allocation4 + $0x180] sm:$0xff] %v2094_v4  ;;  %v2095_v32 = vpack.c.bf16 %v3035_v34, %v1015_v30 }
 0x286   :  { %1874 = vst [vmem:[#allocation4 + $0x188] sm:$0xff] %v2095_v32 }
 0x288   :  { %v1019_v22 = vpop.f32.mrb[100].mxu1 }
 0x289   :  { %1427 = vst [vmem:[#allocation2 + $0x190] sm:$0xff] %v1019_v22  ;;  %v1021_v47 = vpop.f32.mrb[101].mxu1 }
 0x28a   :  { %v2096_v33 = vpack.c.bf16 %v3027_v36, %v1021_v47  ;;  %v1023_v27 = vpop.f32.mrb[102].mxu1 }
 0x28b   :  { %1428 = vst [vmem:[#allocation2 + $0x198] sm:$0xff] %v1023_v27  ;;  %v1025_v28 = vpop.f32.mrb[103].mxu1 }
 0x28c   :  { %1875 = vst [vmem:[#allocation4 + $0x190] sm:$0xff] %v2096_v33  ;;  %v2097_v37 = vpack.c.bf16 %v3032_v24, %v1025_v28 }
 0x28e   :  { %1876 = vst [vmem:[#allocation4 + $0x198] sm:$0xff] %v2097_v37 }
 0x290   :  { %v1029_v15 = vpop.f32.mrb[104].mxu1 }
 0x291   :  { %1429 = vst [vmem:[#allocation2 + $0x1a0] sm:$0xff] %v1029_v15  ;;  %v1031_v55 = vpop.f32.mrb[105].mxu1 }
 0x292   :  { %v2098_v62 = vpack.c.bf16 %v3040_v46, %v1031_v55  ;;  %v1033_v31 = vpop.f32.mrb[106].mxu1 }
 0x293   :  { %1430 = vst [vmem:[#allocation2 + $0x1a8] sm:$0xff] %v1033_v31  ;;  %v1035_v34 = vpop.f32.mrb[107].mxu1 }
 0x294   :  { %1877 = vst [vmem:[#allocation4 + $0x1a0] sm:$0xff] %v2098_v62  ;;  %v2099_v39 = vpack.c.bf16 %v3045_v51, %v1035_v34 }
 0x296   :  { %1878 = vst [vmem:[#allocation4 + $0x1a8] sm:$0xff] %v2099_v39 }
 0x298   :  { %v1039_v36 = vpop.f32.mrb[108].mxu1 }
 0x299   :  { %1431 = vst [vmem:[#allocation2 + $0x1b0] sm:$0xff] %v1039_v36  ;;  %v1041_v60 = vpop.f32.mrb[109].mxu1 }
 0x29a   :  { %v2100_v40 = vpack.c.bf16 %v3037_v42, %v1041_v60  ;;  %v1043_v52 = vpop.f32.mrb[110].mxu1 }
 0x29b   :  { %1432 = vst [vmem:[#allocation2 + $0x1b8] sm:$0xff] %v1043_v52  ;;  %v1045_v24 = vpop.f32.mrb[111].mxu1 }
 0x29c   :  { %1879 = vst [vmem:[#allocation4 + $0x1b0] sm:$0xff] %v2100_v40  ;;  %v2101_v14 = vpack.c.bf16 %v3042_v50, %v1045_v24 }
 0x29e   :  { %1880 = vst [vmem:[#allocation4 + $0x1b8] sm:$0xff] %v2101_v14 }
 0x2a0   :  { %v1049_v46 = vpop.f32.mrb[112].mxu1 }
 0x2a1   :  { %1433 = vst [vmem:[#allocation2 + $0x1c0] sm:$0xff] %v1049_v46  ;;  %v1051_v44 = vpop.f32.mrb[113].mxu1 }
 0x2a2   :  { %v2102_v48 = vpack.c.bf16 %v3050_v61, %v1051_v44  ;;  %v1053_v58 = vpop.f32.mrb[114].mxu1 }
 0x2a3   :  { %1434 = vst [vmem:[#allocation2 + $0x1c8] sm:$0xff] %v1053_v58  ;;  %v1055_v51 = vpop.f32.mrb[115].mxu1 }
 0x2a4   :  { %1881 = vst [vmem:[#allocation4 + $0x1c0] sm:$0xff] %v2102_v48  ;;  %v2103_v35 = vpack.c.bf16 %v3055_v2, %v1055_v51 }
 0x2a6   :  { %1882 = vst [vmem:[#allocation4 + $0x1c8] sm:$0xff] %v2103_v35 }
 0x2a8   :  { %v1059_v42 = vpop.f32.mrb[116].mxu1 }
 0x2a9   :  { %1435 = vst [vmem:[#allocation2 + $0x1d0] sm:$0xff] %v1059_v42  ;;  %v1061_v3 = vpop.f32.mrb[117].mxu1 }
 0x2aa   :  { %v2104_v53 = vpack.c.bf16 %v3047_v56, %v1061_v3  ;;  %v1063_v54 = vpop.f32.mrb[118].mxu1 }
 0x2ab   :  { %1436 = vst [vmem:[#allocation2 + $0x1d8] sm:$0xff] %v1063_v54  ;;  %v1065_v50 = vpop.f32.mrb[119].mxu1 }
 0x2ac   :  { %1883 = vst [vmem:[#allocation4 + $0x1d0] sm:$0xff] %v2104_v53  ;;  %v2105_v38 = vpack.c.bf16 %v3052_v1, %v1065_v50 }
 0x2ae   :  { %1884 = vst [vmem:[#allocation4 + $0x1d8] sm:$0xff] %v2105_v38 }
 0x2b0   :  { %v1069_v61 = vpop.f32.mrb[120].mxu1 }
 0x2b1   :  { %1437 = vst [vmem:[#allocation2 + $0x1e0] sm:$0xff] %v1069_v61  ;;  %v1071_v8 = vpop.f32.mrb[121].mxu1 }
 0x2b2   :  { %v2106_v59 = vpack.c.bf16 %v3060_v12, %v1071_v8  ;;  %v1073_v0 = vpop.f32.mrb[122].mxu1 }
 0x2b3   :  { %1438 = vst [vmem:[#allocation2 + $0x1e8] sm:$0xff] %v1073_v0  ;;  %v1075_v2 = vpop.f32.mrb[123].mxu1 }
 0x2b4   :  { %1885 = vst [vmem:[#allocation4 + $0x1e0] sm:$0xff] %v2106_v59  ;;  %v2107_v63 = vpack.c.bf16 %v3065_v18, %v1075_v2 }
 0x2b6   :  { %1886 = vst [vmem:[#allocation4 + $0x1e8] sm:$0xff] %v2107_v63 }
 0x2b8   :  { %v1079_v56 = vpop.f32.mrb[124].mxu1 }
 0x2b9   :  { %1439 = vst [vmem:[#allocation2 + $0x1f0] sm:$0xff] %v1079_v56  ;;  %v1081_v1 = vpop.f32.mrb[125].mxu1 }
 0x2ba   :  { %v2108_v12 = vpack.c.bf16 %v3057_v9, %v1081_v1  ;;  %v1083_v25 = vpop.f32.mrb[126].mxu1 }
 0x2bb   :  { %1440 = vst [vmem:[#allocation2 + $0x1f8] sm:$0xff] %v1083_v25  ;;  %v1085_v57 = vpop.f32.mrb[127].mxu1 }
 0x2bc   :  { %1887 = vst [vmem:[#allocation4 + $0x1f0] sm:$0xff] %v2108_v12  ;;  %v2109_v18 = vpack.c.bf16 %v3062_v5, %v1085_v57 }
 0x2bd   :  { %2390 = shalt.err (!%p2387_p4)
}
 0x2be   :  { %s2391_s25 = scalar_lea.hbm %s3141_s4, 8192 }
 0x2bf   :  { %p2392_p5 = scmp.ne.s32.totalorder %s3141_s4, %s2391_s25  ;;  %p2395_p6 = scmp.lt.u32.totalorder %s2391_s25, %s3141_s4 }
 0x2c1   :  { %p2397_p7 = pnand %p2395_p6, %p2392_p5 }
 0x2c3   :  { %2400 = shalt.err (!%p2397_p7)
}
 0x2c4   :  { %s2430_s30 = smov 128   ;;  %s2431_s6 = smov 8   ;;  %1888 = vst [vmem:[#allocation4 + $0x1f8] sm:$0xff] %v2109_v18 }
 0x2c5   :  { %1900 = dma.vmem_to_hbm [thread:$0]  %s3097_s2, 8192, %s3141_s4, [#allocation3], %s2430_s30, %s2430_s30, %s2431_s6  }
 0x2c6   :  { %s2401_s9 = scalar_lea.vmem %s3100_s22, 8192  ;;  %p2406_p9 = scmp.lt.s32.totalorder %s3100_s22, %s3100_s22 }
 0x2c7   :  { %p2402_p8 = scmp.ne.s32.totalorder %s3100_s22, %s2401_s9  ;;  %p2407_p10 = scmp.lt.s32.totalorder %s2401_s9, %s2401_s9 }
 0x2c9   :  { %p2408_p11 = por %p2407_p10, %p2406_p9 }
 0x2cb   :  { %p2409_p12 = pnand %p2408_p11, %p2402_p8 }
 0x2cd   :  { %2412 = shalt.err (!%p2409_p12)
}
 0x2ce   :  { %s2413_s12 = scalar_lea.hbm %s3142_s5, 8192 }
 0x2cf   :  { %p2414_p13 = scmp.ne.s32.totalorder %s3142_s5, %s2413_s12  ;;  %p2417_p0 = scmp.lt.u32.totalorder %s2413_s12, %s3142_s5 }
 0x2d1   :  { %p2419_p1 = pnand %p2417_p0, %p2414_p13 }
 0x2d3   :  { %2422 = shalt.err (!%p2419_p1)
}
 0x2d4   :  { %1912 = dma.vmem_to_hbm [thread:$0]  %s3100_s22, 8192, %s3142_s5, [#allocation5], %s2430_s30, %s2430_s30, %s2431_s6  }
 0x2d5   :  { %2423 = dma.done.wait [#allocation3], 8192  }
 0x2d6   :  { %2424 = vsyncadd [#allocation3], 4294959104 }
 0x2d7   :  { %2425 = dma.done.wait [#allocation5], 8192  }
 0x2d8   :  { %2426 = vsyncadd [#allocation5], 4294959104 }
 0x2d9   :  { %1919 = vsyncpa [#allocation3], 1 }
 0x2da   :  { %1920 = vsyncpa [#allocation5], 1 }

</bundles_post_ra>
